<compile_context>
chip_gen: v7x
topology: tpu7x:2x2x1
jax: 0.10.0
libtpu: 0.0.40
codegen_flags: <defaults>
</compile_context>

<pallas_src>
import jax
import jax.numpy as jnp
from jax.experimental import pallas as pl
from jax.experimental.pallas import tpu as pltpu

# Problem sizes (in_channels != out_channels so the downsample path is exercised).
N, CIN, COUT, H, W = 2, 4, 8, 16, 16
H2, W2 = H // 2, W // 2
EPS = 1e-5

# MXU operand precision (bf16 single-pass MXU on v6e/v7x; f32 accumulate either way).
MXU_BF16 = True
DOT_DTYPE = jnp.bfloat16 if MXU_BF16 else jnp.float32
# bf16 operand rounding through two BN-normalized conv stages gives ~1e-2 RMS output
# error; 1e-1 is ~10x the estimated worst case while still catching structural bugs.
TOL = 1e-1 if MXU_BF16 else 2e-3

# Flat padded spatial layout constants.
CINP = 8                              # input channels zero-padded to a full f32 sublane tile
HP = H + 2                            # 1-row halo top/bottom
WP = W + 2                            # minimal 1-col halo left/right (was 32)
S = HP * WP                           # 324 per-image padded slab
RP = ((N * S + 127) // 128) * 128     # 768 flattened lane axis (128-aligned, was 1152)
CNT = float(N * H * W)                # BatchNorm population (interior positions only)

# tap t = 3*kh + kw  ->  flat lane offset of the input pixel that tap reads
TAP_SHIFTS = tuple((kh - 1) * WP + (kw - 1) for kh in range(3) for kw in range(3))


def _shifted(x, s):
    # shifted[:, p] == x[:, p + s].  Wrap-around only contaminates halo/tail lanes,
    # which are masked (BN stats) or never selected (pool) downstream.
    if s == 0:
        return x
    return pltpu.roll(x, (-s) % RP, 1)


def _conv3x3(w_ref, act):
    # Per-tap accumulation: 9 small MXU pushes, no materialized im2col concat.
    # w_ref: (9, M, C) in DOT_DTYPE; act: (C, RP) f32 (zero halo); result (M, RP) f32.
    acc = None
    for t, s in enumerate(TAP_SHIFTS):
        xs = _shifted(act, s).astype(DOT_DTYPE)       # cast rolled activation per tap
        c = jnp.dot(w_ref[t], xs, preferred_element_type=jnp.float32)
        acc = c if acc is None else acc + c
    return acc


def _fold_bn(s1, s2, gamma, beta):
    # Training-mode BatchNorm (biased variance) folded into one per-channel scale/bias.
    mean = s1 * (1.0 / CNT)
    var = s2 * (1.0 / CNT) - mean * mean
    scale = gamma * jax.lax.rsqrt(var + EPS)
    bias = beta - mean * scale
    return scale, bias


def residual_block_kernel(x_ref, w1d_ref, w2_ref, bnp_ref, mask_ref, out_ref):
    mask = mask_ref[...]                               # (1, RP) interior-lane mask
    bnp = bnp_ref[...]                                 # (COUT, 6)
    g1, be1 = bnp[:, 0:1], bnp[:, 1:2]
    g2, be2 = bnp[:, 2:3], bnp[:, 3:4]
    gd, bed = bnp[:, 4:5], bnp[:, 5:6]

    x = x_ref[...]                                     # (CINP, RP) f32, zero halo ring

    # conv1 (3x3, pad 1) with the 1x1 downsample fused as extra rows of the centre tap.
    hi = _conv3x3(w1d_ref, x)                          # (2*COUT, RP) f32
    h1_raw = hi[0:COUT, :]
    idn_raw = hi[COUT:2 * COUT, :]

    # bn1 + relu (conv biases omitted: exactly cancelled by batch-mean subtraction).
    h1m = h1_raw * mask
    sums1 = jnp.sum(jnp.concatenate([h1m, h1m * h1m], axis=0), axis=1, keepdims=True)
    sc1, of1 = _fold_bn(sums1[0:COUT], sums1[COUT:2 * COUT], g1, be1)
    h1 = jnp.maximum(h1_raw * sc1 + of1, 0.0) * mask   # re-zero halo ring for conv2

    # conv2 (3x3, pad 1).
    h2_raw = _conv3x3(w2_ref, h1)                      # (COUT, RP)

    # bn2 + downsample-bn: statistics merged into a single masked lane reduction.
    h2m = h2_raw * mask
    idm = idn_raw * mask
    stat = jnp.concatenate([h2m, idm, h2m * h2m, idm * idm], axis=0)   # (4*COUT, RP)
    sums = jnp.sum(stat, axis=1, keepdims=True)                        # (4*COUT, 1)
    sc2, of2 = _fold_bn(sums[0:COUT], sums[2 * COUT:3 * COUT], g2, be2)
    scd, ofd = _fold_bn(sums[COUT:2 * COUT], sums[3 * COUT:4 * COUT], gd, bed)

    # residual add + relu (halo/tail lanes hold garbage but are never selected later).
    y = jnp.maximum((h2_raw * sc2 + of2) + (idn_raw * scd + ofd), 0.0)

    # 2x2 / stride-2 max pool: two shifted maxima; store the dense pooled slab with one
    # lane-dense store — the stride-2 selection happens in the wrapper.
    m = jnp.maximum(y, _shifted(y, 1))                 # max over the w pair
    m = jnp.maximum(m, _shifted(m, WP))                # max over the h pair -> 2x2 max
    out_ref[...] = m


# ----------------------------------------------------------------------------------
# Host-side packing (pure layout plumbing) and wrapper.
# ----------------------------------------------------------------------------------
def _flatten_input(x_nchw):
    xc = jnp.pad(x_nchw, ((0, 0), (0, CINP - CIN), (0, 0), (0, 0)))    # pad channels
    xc = jnp.transpose(xc, (1, 0, 2, 3))                               # (CINP, N, H, W)
    xc = jnp.pad(xc, ((0, 0), (0, 0), (1, 1), (1, 1)))                 # zero halo ring
    xf = xc.reshape(CINP, N * S)
    return jnp.pad(xf, ((0, 0), (0, RP - N * S)))                      # 128-aligned lanes


def pack_params(params):
    # Hoisted out of the per-call jitted path; run once when parameters are static.
    (w1, b1, g1, be1, w2, b2, g2, be2, wd, bd, gd, bed) = params
    del b1, b2, bd  # exactly cancelled by training-mode BN mean subtraction

    # conv1 weight, tap-major: (9, COUT, CINP); 1x1 downsample at the centre tap (t=4).
    w1p = jnp.pad(w1, ((0, 0), (0, CINP - CIN), (0, 0), (0, 0)))       # (COUT, CINP, 3, 3)
    w1t = jnp.transpose(w1p, (2, 3, 0, 1)).reshape(9, COUT, CINP)
    wdt = jnp.zeros((9, COUT, CINP), jnp.float32)
    wdt = wdt.at[4, :, :CIN].set(wd[:, :, 0, 0])
    w1d = jnp.concatenate([w1t, wdt], axis=1).astype(DOT_DTYPE)        # (9, 2*COUT, CINP)

    w2t = jnp.transpose(w2, (2, 3, 0, 1)).reshape(9, COUT, COUT).astype(DOT_DTYPE)

    bnp = jnp.stack([g1, be1, g2, be2, gd, bed], axis=1)               # (COUT, 6) f32

    # Interior-lane mask (WP no longer a power of two -> precompute and pass in).
    q = jnp.arange(RP)
    rem = q % S
    hp = rem // WP
    wp = rem % WP
    inside = (q < N * S) & (hp >= 1) & (hp <= H) & (wp >= 1) & (wp <= W)
    mask = inside.astype(jnp.float32).reshape(1, RP)
    return w1d, w2t, bnp, mask


@jax.jit
def residual_block(x_nchw, w1d, w2t, bnp, mask):
    xf = _flatten_input(x_nchw)
    pooled = pl.pallas_call(
        residual_block_kernel,
        out_shape=jax.ShapeDtypeStruct((COUT, RP), jnp.float32),
        in_specs=[pl.BlockSpec(memory_space=pltpu.MemorySpace.VMEM)] * 5,
        out_specs=pl.BlockSpec(memory_space=pltpu.MemorySpace.VMEM),
    )(xf, w1d, w2t, bnp, mask)
    # Stride-2 selection of the dense 2x2-max slab + NCHW transpose (layout plumbing).
    m = pooled[:, :N * S].reshape(COUT, N, HP, WP)
    out = m[:, :, 1:H + 1:2, 1:W + 1:2]                                # (COUT, N, H2, W2)
    return jnp.transpose(out, (1, 0, 2, 3))                            # (N, COUT, H2, W2)


# ----------------------------------------------------------------------------------
# Parameters and pure-JAX reference (for a correctness self-check).
# ----------------------------------------------------------------------------------
def make_params(key):
    ks = jax.random.split(key, 6)

    def u(k, shape, fan_in):
        bound = 1.0 / (fan_in ** 0.5)
        return jax.random.uniform(k, shape, jnp.float32, -bound, bound)

    w1 = u(ks[0], (COUT, CIN, 3, 3), CIN * 9)
    b1 = u(ks[1], (COUT,), CIN * 9)
    w2 = u(ks[2], (COUT, COUT, 3, 3), COUT * 9)
    b2 = u(ks[3], (COUT,), COUT * 9)
    wd = u(ks[4], (COUT, CIN, 1, 1), CIN)
    bd = u(ks[5], (COUT,), CIN)
    ones = jnp.ones((COUT,), jnp.float32)    # BatchNorm default weight
    zeros = jnp.zeros((COUT,), jnp.float32)  # BatchNorm default bias
    return (w1, b1, ones, zeros, w2, b2, ones, zeros, wd, bd, ones, zeros)


def reference(x, params):
    (w1, b1, g1, be1, w2, b2, g2, be2, wd, bd, gd, bed) = params

    def conv(x, w, b, pad):
        y = jax.lax.conv_general_dilated(
            x, w, (1, 1), [(pad, pad), (pad, pad)],
            dimension_numbers=("NCHW", "OIHW", "NCHW"))
        return y + b.reshape(1, -1, 1, 1)

    def bn(y, g, bta):
        mu = jnp.mean(y, axis=(0, 2, 3), keepdims=True)
        var = jnp.mean((y - mu) ** 2, axis=(0, 2, 3), keepdims=True)
        return (y - mu) * jax.lax.rsqrt(var + EPS) * g.reshape(1, -1, 1, 1) \
               + bta.reshape(1, -1, 1, 1)

    h = jax.nn.relu(bn(conv(x, w1, b1, 1), g1, be1))
    h = bn(conv(h, w2, b2, 1), g2, be2)
    idn = bn(conv(x, wd, bd, 0), gd, bed)
    y = jax.nn.relu(h + idn)
    return jnp.max(y.reshape(N, COUT, H2, 2, W2, 2), axis=(3, 5))


if __name__ == "__main__":
    key = jax.random.PRNGKey(0)
    kx, kp = jax.random.split(key)
    x = jax.random.normal(kx, (N, CIN, H, W), jnp.float32)             # NCHW like PyTorch
    params = make_params(kp)

    packed = pack_params(params)                # hoisted: packed once, reused every call
    out = residual_block(x, *packed)
    jax.block_until_ready(out)
    assert out.shape == (N, COUT, H2, W2)
    assert bool(jnp.all(jnp.isfinite(out)))

    ref = reference(x, params)
    err = float(jnp.max(jnp.abs(out - ref)))
    assert err < TOL, f"max abs error vs reference: {err}"
    print("KERNEL_OK")
</pallas_src>

<mosaic_0001>
module attributes {stable_mosaic.version = 11 : i64} {
  func.func @residual_block_kernel(%arg0: memref<8x768xf32, #tpu.memory_space<vmem>>, %arg1: memref<9x16x8xbf16, #tpu.memory_space<vmem>>, %arg2: memref<9x8x8xbf16, #tpu.memory_space<vmem>>, %arg3: memref<8x6xf32, #tpu.memory_space<vmem>>, %arg4: memref<1x768xf32, #tpu.memory_space<vmem>>, %arg5: memref<8x768xf32, #tpu.memory_space<vmem>>) attributes {dimension_semantics = [], scalar_prefetch = 0 : i64, scratch_operands = 0 : i64, tpu.core_type = #tpu.core_type<tc>} {
    %c0 = arith.constant 0 : index
    %c0_0 = arith.constant 0 : index
    %0 = vector.load %arg4[%c0, %c0_0] : memref<1x768xf32, #tpu.memory_space<vmem>>, vector<1x768xf32>
    %c0_1 = arith.constant 0 : index
    %c0_2 = arith.constant 0 : index
    %1 = vector.load %arg3[%c0_1, %c0_2] : memref<8x6xf32, #tpu.memory_space<vmem>>, vector<8x6xf32>
    %2 = vector.extract_strided_slice %1 {offsets = [0, 0], sizes = [8, 1], strides = [1, 1]} : vector<8x6xf32> to vector<8x1xf32>
    %3 = vector.extract_strided_slice %1 {offsets = [0, 1], sizes = [8, 1], strides = [1, 1]} : vector<8x6xf32> to vector<8x1xf32>
    %4 = vector.extract_strided_slice %1 {offsets = [0, 2], sizes = [8, 1], strides = [1, 1]} : vector<8x6xf32> to vector<8x1xf32>
    %5 = vector.extract_strided_slice %1 {offsets = [0, 3], sizes = [8, 1], strides = [1, 1]} : vector<8x6xf32> to vector<8x1xf32>
    %6 = vector.extract_strided_slice %1 {offsets = [0, 4], sizes = [8, 1], strides = [1, 1]} : vector<8x6xf32> to vector<8x1xf32>
    %7 = vector.extract_strided_slice %1 {offsets = [0, 5], sizes = [8, 1], strides = [1, 1]} : vector<8x6xf32> to vector<8x1xf32>
    %c0_3 = arith.constant 0 : index
    %c0_4 = arith.constant 0 : index
    %8 = vector.load %arg0[%c0_3, %c0_4] : memref<8x768xf32, #tpu.memory_space<vmem>>, vector<8x768xf32>
    %c19_i32 = arith.constant 19 : i32
    %9 = tpu.dynamic_rotate %8 by %c19_i32 dim 1 : vector<8x768xf32>, i32 -> vector<8x768xf32>
    %10 = arith.truncf %9 : vector<8x768xf32> to vector<8x768xbf16>
    %c0_5 = arith.constant 0 : index
    %c0_6 = arith.constant 0 : index
    %c0_7 = arith.constant 0 : index
    %11 = vector.load %arg1[%c0_5, %c0_6, %c0_7] : memref<9x16x8xbf16, #tpu.memory_space<vmem>>, vector<1x16x8xbf16>
    %12 = vector.shape_cast %11 : vector<1x16x8xbf16> to vector<16x8xbf16>
    %cst = arith.constant dense<0.000000e+00> : vector<16x768xf32>
    %13 = tpu.matmul %12, %10, %cst {dimension_numbers = #tpu.dot_dimension_numbers<[1], [0], [0], [1], [0, 0, 1, 1], [], []>} : vector<16x8xbf16>, vector<8x768xbf16>, vector<16x768xf32> -> vector<16x768xf32>
    %c18_i32 = arith.constant 18 : i32
    %14 = tpu.dynamic_rotate %8 by %c18_i32 dim 1 : vector<8x768xf32>, i32 -> vector<8x768xf32>
    %15 = arith.truncf %14 : vector<8x768xf32> to vector<8x768xbf16>
    %c1 = arith.constant 1 : index
    %c0_8 = arith.constant 0 : index
    %c0_9 = arith.constant 0 : index
    %16 = vector.load %arg1[%c1, %c0_8, %c0_9] : memref<9x16x8xbf16, #tpu.memory_space<vmem>>, vector<1x16x8xbf16>
    %17 = vector.shape_cast %16 : vector<1x16x8xbf16> to vector<16x8xbf16>
    %cst_10 = arith.constant dense<0.000000e+00> : vector<16x768xf32>
    %18 = tpu.matmul %17, %15, %cst_10 {dimension_numbers = #tpu.dot_dimension_numbers<[1], [0], [0], [1], [0, 0, 1, 1], [], []>} : vector<16x8xbf16>, vector<8x768xbf16>, vector<16x768xf32> -> vector<16x768xf32>
    %19 = arith.addf %13, %18 : vector<16x768xf32>
    %c17_i32 = arith.constant 17 : i32
    %20 = tpu.dynamic_rotate %8 by %c17_i32 dim 1 : vector<8x768xf32>, i32 -> vector<8x768xf32>
    %21 = arith.truncf %20 : vector<8x768xf32> to vector<8x768xbf16>
    %c2 = arith.constant 2 : index
    %c0_11 = arith.constant 0 : index
    %c0_12 = arith.constant 0 : index
    %22 = vector.load %arg1[%c2, %c0_11, %c0_12] : memref<9x16x8xbf16, #tpu.memory_space<vmem>>, vector<1x16x8xbf16>
    %23 = vector.shape_cast %22 : vector<1x16x8xbf16> to vector<16x8xbf16>
    %cst_13 = arith.constant dense<0.000000e+00> : vector<16x768xf32>
    %24 = tpu.matmul %23, %21, %cst_13 {dimension_numbers = #tpu.dot_dimension_numbers<[1], [0], [0], [1], [0, 0, 1, 1], [], []>} : vector<16x8xbf16>, vector<8x768xbf16>, vector<16x768xf32> -> vector<16x768xf32>
    %25 = arith.addf %19, %24 : vector<16x768xf32>
    %c1_i32 = arith.constant 1 : i32
    %26 = tpu.dynamic_rotate %8 by %c1_i32 dim 1 : vector<8x768xf32>, i32 -> vector<8x768xf32>
    %27 = arith.truncf %26 : vector<8x768xf32> to vector<8x768xbf16>
    %c3 = arith.constant 3 : index
    %c0_14 = arith.constant 0 : index
    %c0_15 = arith.constant 0 : index
    %28 = vector.load %arg1[%c3, %c0_14, %c0_15] : memref<9x16x8xbf16, #tpu.memory_space<vmem>>, vector<1x16x8xbf16>
    %29 = vector.shape_cast %28 : vector<1x16x8xbf16> to vector<16x8xbf16>
    %cst_16 = arith.constant dense<0.000000e+00> : vector<16x768xf32>
    %30 = tpu.matmul %29, %27, %cst_16 {dimension_numbers = #tpu.dot_dimension_numbers<[1], [0], [0], [1], [0, 0, 1, 1], [], []>} : vector<16x8xbf16>, vector<8x768xbf16>, vector<16x768xf32> -> vector<16x768xf32>
    %31 = arith.addf %25, %30 : vector<16x768xf32>
    %32 = arith.truncf %8 : vector<8x768xf32> to vector<8x768xbf16>
    %c4 = arith.constant 4 : index
    %c0_17 = arith.constant 0 : index
    %c0_18 = arith.constant 0 : index
    %33 = vector.load %arg1[%c4, %c0_17, %c0_18] : memref<9x16x8xbf16, #tpu.memory_space<vmem>>, vector<1x16x8xbf16>
    %34 = vector.shape_cast %33 : vector<1x16x8xbf16> to vector<16x8xbf16>
    %cst_19 = arith.constant dense<0.000000e+00> : vector<16x768xf32>
    %35 = tpu.matmul %34, %32, %cst_19 {dimension_numbers = #tpu.dot_dimension_numbers<[1], [0], [0], [1], [0, 0, 1, 1], [], []>} : vector<16x8xbf16>, vector<8x768xbf16>, vector<16x768xf32> -> vector<16x768xf32>
    %36 = arith.addf %31, %35 : vector<16x768xf32>
    %c767_i32 = arith.constant 767 : i32
    %37 = tpu.dynamic_rotate %8 by %c767_i32 dim 1 : vector<8x768xf32>, i32 -> vector<8x768xf32>
    %38 = arith.truncf %37 : vector<8x768xf32> to vector<8x768xbf16>
    %c5 = arith.constant 5 : index
    %c0_20 = arith.constant 0 : index
    %c0_21 = arith.constant 0 : index
    %39 = vector.load %arg1[%c5, %c0_20, %c0_21] : memref<9x16x8xbf16, #tpu.memory_space<vmem>>, vector<1x16x8xbf16>
    %40 = vector.shape_cast %39 : vector<1x16x8xbf16> to vector<16x8xbf16>
    %cst_22 = arith.constant dense<0.000000e+00> : vector<16x768xf32>
    %41 = tpu.matmul %40, %38, %cst_22 {dimension_numbers = #tpu.dot_dimension_numbers<[1], [0], [0], [1], [0, 0, 1, 1], [], []>} : vector<16x8xbf16>, vector<8x768xbf16>, vector<16x768xf32> -> vector<16x768xf32>
    %42 = arith.addf %36, %41 : vector<16x768xf32>
    %c751_i32 = arith.constant 751 : i32
    %43 = tpu.dynamic_rotate %8 by %c751_i32 dim 1 : vector<8x768xf32>, i32 -> vector<8x768xf32>
    %44 = arith.truncf %43 : vector<8x768xf32> to vector<8x768xbf16>
    %c6 = arith.constant 6 : index
    %c0_23 = arith.constant 0 : index
    %c0_24 = arith.constant 0 : index
    %45 = vector.load %arg1[%c6, %c0_23, %c0_24] : memref<9x16x8xbf16, #tpu.memory_space<vmem>>, vector<1x16x8xbf16>
    %46 = vector.shape_cast %45 : vector<1x16x8xbf16> to vector<16x8xbf16>
    %cst_25 = arith.constant dense<0.000000e+00> : vector<16x768xf32>
    %47 = tpu.matmul %46, %44, %cst_25 {dimension_numbers = #tpu.dot_dimension_numbers<[1], [0], [0], [1], [0, 0, 1, 1], [], []>} : vector<16x8xbf16>, vector<8x768xbf16>, vector<16x768xf32> -> vector<16x768xf32>
    %48 = arith.addf %42, %47 : vector<16x768xf32>
    %c750_i32 = arith.constant 750 : i32
    %49 = tpu.dynamic_rotate %8 by %c750_i32 dim 1 : vector<8x768xf32>, i32 -> vector<8x768xf32>
    %50 = arith.truncf %49 : vector<8x768xf32> to vector<8x768xbf16>
    %c7 = arith.constant 7 : index
    %c0_26 = arith.constant 0 : index
    %c0_27 = arith.constant 0 : index
    %51 = vector.load %arg1[%c7, %c0_26, %c0_27] : memref<9x16x8xbf16, #tpu.memory_space<vmem>>, vector<1x16x8xbf16>
    %52 = vector.shape_cast %51 : vector<1x16x8xbf16> to vector<16x8xbf16>
    %cst_28 = arith.constant dense<0.000000e+00> : vector<16x768xf32>
    %53 = tpu.matmul %52, %50, %cst_28 {dimension_numbers = #tpu.dot_dimension_numbers<[1], [0], [0], [1], [0, 0, 1, 1], [], []>} : vector<16x8xbf16>, vector<8x768xbf16>, vector<16x768xf32> -> vector<16x768xf32>
    %54 = arith.addf %48, %53 : vector<16x768xf32>
    %c749_i32 = arith.constant 749 : i32
    %55 = tpu.dynamic_rotate %8 by %c749_i32 dim 1 : vector<8x768xf32>, i32 -> vector<8x768xf32>
    %56 = arith.truncf %55 : vector<8x768xf32> to vector<8x768xbf16>
    %c8 = arith.constant 8 : index
    %c0_29 = arith.constant 0 : index
    %c0_30 = arith.constant 0 : index
    %57 = vector.load %arg1[%c8, %c0_29, %c0_30] : memref<9x16x8xbf16, #tpu.memory_space<vmem>>, vector<1x16x8xbf16>
    %58 = vector.shape_cast %57 : vector<1x16x8xbf16> to vector<16x8xbf16>
    %cst_31 = arith.constant dense<0.000000e+00> : vector<16x768xf32>
    %59 = tpu.matmul %58, %56, %cst_31 {dimension_numbers = #tpu.dot_dimension_numbers<[1], [0], [0], [1], [0, 0, 1, 1], [], []>} : vector<16x8xbf16>, vector<8x768xbf16>, vector<16x768xf32> -> vector<16x768xf32>
    %60 = arith.addf %54, %59 : vector<16x768xf32>
    %61 = vector.extract_strided_slice %60 {offsets = [0, 0], sizes = [8, 768], strides = [1, 1]} : vector<16x768xf32> to vector<8x768xf32>
    %62 = vector.extract_strided_slice %60 {offsets = [8, 0], sizes = [8, 768], strides = [1, 1]} : vector<16x768xf32> to vector<8x768xf32>
    %63 = vector.broadcast %0 : vector<1x768xf32> to vector<8x768xf32>
    %64 = arith.mulf %61, %63 : vector<8x768xf32>
    %65 = arith.mulf %64, %64 : vector<8x768xf32>
    %66 = tpu.concatenate %64, %65 in 0 : vector<8x768xf32>, vector<8x768xf32> -> vector<16x768xf32>
    %cst_32 = arith.constant dense<0.000000e+00> : vector<16xf32>
    %67 = vector.multi_reduction <add>, %66, %cst_32 [1] : vector<16x768xf32> to vector<16xf32>
    %68 = vector.shape_cast %67 : vector<16xf32> to vector<16x1xf32>
    %69 = vector.extract_strided_slice %68 {offsets = [0, 0], sizes = [8, 1], strides = [1, 1]} : vector<16x1xf32> to vector<8x1xf32>
    %70 = vector.extract_strided_slice %68 {offsets = [8, 0], sizes = [8, 1], strides = [1, 1]} : vector<16x1xf32> to vector<8x1xf32>
    %cst_33 = arith.constant 0.001953125 : f32
    %71 = vector.broadcast %cst_33 : f32 to vector<8x1xf32>
    %72 = arith.mulf %69, %71 : vector<8x1xf32>
    %cst_34 = arith.constant 0.001953125 : f32
    %73 = vector.broadcast %cst_34 : f32 to vector<8x1xf32>
    %74 = arith.mulf %70, %73 : vector<8x1xf32>
    %75 = arith.mulf %72, %72 : vector<8x1xf32>
    %76 = arith.subf %74, %75 : vector<8x1xf32>
    %cst_35 = arith.constant 9.99999974E-6 : f32
    %77 = vector.broadcast %cst_35 : f32 to vector<8x1xf32>
    %78 = arith.addf %76, %77 : vector<8x1xf32>
    %79 = math.rsqrt %78 : vector<8x1xf32>
    %80 = arith.mulf %2, %79 : vector<8x1xf32>
    %81 = arith.mulf %72, %80 : vector<8x1xf32>
    %82 = arith.subf %3, %81 : vector<8x1xf32>
    %83 = vector.broadcast %80 : vector<8x1xf32> to vector<8x768xf32>
    %84 = arith.mulf %61, %83 : vector<8x768xf32>
    %85 = vector.broadcast %82 : vector<8x1xf32> to vector<8x768xf32>
    %86 = arith.addf %84, %85 : vector<8x768xf32>
    %cst_36 = arith.constant 0.000000e+00 : f32
    %87 = vector.broadcast %cst_36 : f32 to vector<8x768xf32>
    %88 = arith.maximumf %86, %87 : vector<8x768xf32>
    %89 = vector.broadcast %0 : vector<1x768xf32> to vector<8x768xf32>
    %90 = arith.mulf %88, %89 : vector<8x768xf32>
    %c19_i32_37 = arith.constant 19 : i32
    %91 = tpu.dynamic_rotate %90 by %c19_i32_37 dim 1 : vector<8x768xf32>, i32 -> vector<8x768xf32>
    %92 = arith.truncf %91 : vector<8x768xf32> to vector<8x768xbf16>
    %c0_38 = arith.constant 0 : index
    %c0_39 = arith.constant 0 : index
    %c0_40 = arith.constant 0 : index
    %93 = vector.load %arg2[%c0_38, %c0_39, %c0_40] : memref<9x8x8xbf16, #tpu.memory_space<vmem>>, vector<1x8x8xbf16>
    %94 = vector.shape_cast %93 : vector<1x8x8xbf16> to vector<8x8xbf16>
    %cst_41 = arith.constant dense<0.000000e+00> : vector<8x768xf32>
    %95 = tpu.matmul %94, %92, %cst_41 {dimension_numbers = #tpu.dot_dimension_numbers<[1], [0], [0], [1], [0, 0, 1, 1], [], []>} : vector<8x8xbf16>, vector<8x768xbf16>, vector<8x768xf32> -> vector<8x768xf32>
    %c18_i32_42 = arith.constant 18 : i32
    %96 = tpu.dynamic_rotate %90 by %c18_i32_42 dim 1 : vector<8x768xf32>, i32 -> vector<8x768xf32>
    %97 = arith.truncf %96 : vector<8x768xf32> to vector<8x768xbf16>
    %c1_43 = arith.constant 1 : index
    %c0_44 = arith.constant 0 : index
    %c0_45 = arith.constant 0 : index
    %98 = vector.load %arg2[%c1_43, %c0_44, %c0_45] : memref<9x8x8xbf16, #tpu.memory_space<vmem>>, vector<1x8x8xbf16>
    %99 = vector.shape_cast %98 : vector<1x8x8xbf16> to vector<8x8xbf16>
    %cst_46 = arith.constant dense<0.000000e+00> : vector<8x768xf32>
    %100 = tpu.matmul %99, %97, %cst_46 {dimension_numbers = #tpu.dot_dimension_numbers<[1], [0], [0], [1], [0, 0, 1, 1], [], []>} : vector<8x8xbf16>, vector<8x768xbf16>, vector<8x768xf32> -> vector<8x768xf32>
    %101 = arith.addf %95, %100 : vector<8x768xf32>
    %c17_i32_47 = arith.constant 17 : i32
    %102 = tpu.dynamic_rotate %90 by %c17_i32_47 dim 1 : vector<8x768xf32>, i32 -> vector<8x768xf32>
    %103 = arith.truncf %102 : vector<8x768xf32> to vector<8x768xbf16>
    %c2_48 = arith.constant 2 : index
    %c0_49 = arith.constant 0 : index
    %c0_50 = arith.constant 0 : index
    %104 = vector.load %arg2[%c2_48, %c0_49, %c0_50] : memref<9x8x8xbf16, #tpu.memory_space<vmem>>, vector<1x8x8xbf16>
    %105 = vector.shape_cast %104 : vector<1x8x8xbf16> to vector<8x8xbf16>
    %cst_51 = arith.constant dense<0.000000e+00> : vector<8x768xf32>
    %106 = tpu.matmul %105, %103, %cst_51 {dimension_numbers = #tpu.dot_dimension_numbers<[1], [0], [0], [1], [0, 0, 1, 1], [], []>} : vector<8x8xbf16>, vector<8x768xbf16>, vector<8x768xf32> -> vector<8x768xf32>
    %107 = arith.addf %101, %106 : vector<8x768xf32>
    %c1_i32_52 = arith.constant 1 : i32
    %108 = tpu.dynamic_rotate %90 by %c1_i32_52 dim 1 : vector<8x768xf32>, i32 -> vector<8x768xf32>
    %109 = arith.truncf %108 : vector<8x768xf32> to vector<8x768xbf16>
    %c3_53 = arith.constant 3 : index
    %c0_54 = arith.constant 0 : index
    %c0_55 = arith.constant 0 : index
    %110 = vector.load %arg2[%c3_53, %c0_54, %c0_55] : memref<9x8x8xbf16, #tpu.memory_space<vmem>>, vector<1x8x8xbf16>
    %111 = vector.shape_cast %110 : vector<1x8x8xbf16> to vector<8x8xbf16>
    %cst_56 = arith.constant dense<0.000000e+00> : vector<8x768xf32>
    %112 = tpu.matmul %111, %109, %cst_56 {dimension_numbers = #tpu.dot_dimension_numbers<[1], [0], [0], [1], [0, 0, 1, 1], [], []>} : vector<8x8xbf16>, vector<8x768xbf16>, vector<8x768xf32> -> vector<8x768xf32>
    %113 = arith.addf %107, %112 : vector<8x768xf32>
    %114 = arith.truncf %90 : vector<8x768xf32> to vector<8x768xbf16>
    %c4_57 = arith.constant 4 : index
    %c0_58 = arith.constant 0 : index
    %c0_59 = arith.constant 0 : index
    %115 = vector.load %arg2[%c4_57, %c0_58, %c0_59] : memref<9x8x8xbf16, #tpu.memory_space<vmem>>, vector<1x8x8xbf16>
    %116 = vector.shape_cast %115 : vector<1x8x8xbf16> to vector<8x8xbf16>
    %cst_60 = arith.constant dense<0.000000e+00> : vector<8x768xf32>
    %117 = tpu.matmul %116, %114, %cst_60 {dimension_numbers = #tpu.dot_dimension_numbers<[1], [0], [0], [1], [0, 0, 1, 1], [], []>} : vector<8x8xbf16>, vector<8x768xbf16>, vector<8x768xf32> -> vector<8x768xf32>
    %118 = arith.addf %113, %117 : vector<8x768xf32>
    %c767_i32_61 = arith.constant 767 : i32
    %119 = tpu.dynamic_rotate %90 by %c767_i32_61 dim 1 : vector<8x768xf32>, i32 -> vector<8x768xf32>
    %120 = arith.truncf %119 : vector<8x768xf32> to vector<8x768xbf16>
    %c5_62 = arith.constant 5 : index
    %c0_63 = arith.constant 0 : index
    %c0_64 = arith.constant 0 : index
    %121 = vector.load %arg2[%c5_62, %c0_63, %c0_64] : memref<9x8x8xbf16, #tpu.memory_space<vmem>>, vector<1x8x8xbf16>
    %122 = vector.shape_cast %121 : vector<1x8x8xbf16> to vector<8x8xbf16>
    %cst_65 = arith.constant dense<0.000000e+00> : vector<8x768xf32>
    %123 = tpu.matmul %122, %120, %cst_65 {dimension_numbers = #tpu.dot_dimension_numbers<[1], [0], [0], [1], [0, 0, 1, 1], [], []>} : vector<8x8xbf16>, vector<8x768xbf16>, vector<8x768xf32> -> vector<8x768xf32>
    %124 = arith.addf %118, %123 : vector<8x768xf32>
    %c751_i32_66 = arith.constant 751 : i32
    %125 = tpu.dynamic_rotate %90 by %c751_i32_66 dim 1 : vector<8x768xf32>, i32 -> vector<8x768xf32>
    %126 = arith.truncf %125 : vector<8x768xf32> to vector<8x768xbf16>
    %c6_67 = arith.constant 6 : index
    %c0_68 = arith.constant 0 : index
    %c0_69 = arith.constant 0 : index
    %127 = vector.load %arg2[%c6_67, %c0_68, %c0_69] : memref<9x8x8xbf16, #tpu.memory_space<vmem>>, vector<1x8x8xbf16>
    %128 = vector.shape_cast %127 : vector<1x8x8xbf16> to vector<8x8xbf16>
    %cst_70 = arith.constant dense<0.000000e+00> : vector<8x768xf32>
    %129 = tpu.matmul %128, %126, %cst_70 {dimension_numbers = #tpu.dot_dimension_numbers<[1], [0], [0], [1], [0, 0, 1, 1], [], []>} : vector<8x8xbf16>, vector<8x768xbf16>, vector<8x768xf32> -> vector<8x768xf32>
    %130 = arith.addf %124, %129 : vector<8x768xf32>
    %c750_i32_71 = arith.constant 750 : i32
    %131 = tpu.dynamic_rotate %90 by %c750_i32_71 dim 1 : vector<8x768xf32>, i32 -> vector<8x768xf32>
    %132 = arith.truncf %131 : vector<8x768xf32> to vector<8x768xbf16>
    %c7_72 = arith.constant 7 : index
    %c0_73 = arith.constant 0 : index
    %c0_74 = arith.constant 0 : index
    %133 = vector.load %arg2[%c7_72, %c0_73, %c0_74] : memref<9x8x8xbf16, #tpu.memory_space<vmem>>, vector<1x8x8xbf16>
    %134 = vector.shape_cast %133 : vector<1x8x8xbf16> to vector<8x8xbf16>
    %cst_75 = arith.constant dense<0.000000e+00> : vector<8x768xf32>
    %135 = tpu.matmul %134, %132, %cst_75 {dimension_numbers = #tpu.dot_dimension_numbers<[1], [0], [0], [1], [0, 0, 1, 1], [], []>} : vector<8x8xbf16>, vector<8x768xbf16>, vector<8x768xf32> -> vector<8x768xf32>
    %136 = arith.addf %130, %135 : vector<8x768xf32>
    %c749_i32_76 = arith.constant 749 : i32
    %137 = tpu.dynamic_rotate %90 by %c749_i32_76 dim 1 : vector<8x768xf32>, i32 -> vector<8x768xf32>
    %138 = arith.truncf %137 : vector<8x768xf32> to vector<8x768xbf16>
    %c8_77 = arith.constant 8 : index
    %c0_78 = arith.constant 0 : index
    %c0_79 = arith.constant 0 : index
    %139 = vector.load %arg2[%c8_77, %c0_78, %c0_79] : memref<9x8x8xbf16, #tpu.memory_space<vmem>>, vector<1x8x8xbf16>
    %140 = vector.shape_cast %139 : vector<1x8x8xbf16> to vector<8x8xbf16>
    %cst_80 = arith.constant dense<0.000000e+00> : vector<8x768xf32>
    %141 = tpu.matmul %140, %138, %cst_80 {dimension_numbers = #tpu.dot_dimension_numbers<[1], [0], [0], [1], [0, 0, 1, 1], [], []>} : vector<8x8xbf16>, vector<8x768xbf16>, vector<8x768xf32> -> vector<8x768xf32>
    %142 = arith.addf %136, %141 : vector<8x768xf32>
    %143 = vector.broadcast %0 : vector<1x768xf32> to vector<8x768xf32>
    %144 = arith.mulf %142, %143 : vector<8x768xf32>
    %145 = vector.broadcast %0 : vector<1x768xf32> to vector<8x768xf32>
    %146 = arith.mulf %62, %145 : vector<8x768xf32>
    %147 = arith.mulf %144, %144 : vector<8x768xf32>
    %148 = arith.mulf %146, %146 : vector<8x768xf32>
    %149 = tpu.concatenate %144, %146, %147, %148 in 0 : vector<8x768xf32>, vector<8x768xf32>, vector<8x768xf32>, vector<8x768xf32> -> vector<32x768xf32>
    %cst_81 = arith.constant dense<0.000000e+00> : vector<32xf32>
    %150 = vector.multi_reduction <add>, %149, %cst_81 [1] : vector<32x768xf32> to vector<32xf32>
    %151 = vector.shape_cast %150 : vector<32xf32> to vector<32x1xf32>
    %152 = vector.extract_strided_slice %151 {offsets = [0, 0], sizes = [8, 1], strides = [1, 1]} : vector<32x1xf32> to vector<8x1xf32>
    %153 = vector.extract_strided_slice %151 {offsets = [16, 0], sizes = [8, 1], strides = [1, 1]} : vector<32x1xf32> to vector<8x1xf32>
    %cst_82 = arith.constant 0.001953125 : f32
    %154 = vector.broadcast %cst_82 : f32 to vector<8x1xf32>
    %155 = arith.mulf %152, %154 : vector<8x1xf32>
    %cst_83 = arith.constant 0.001953125 : f32
    %156 = vector.broadcast %cst_83 : f32 to vector<8x1xf32>
    %157 = arith.mulf %153, %156 : vector<8x1xf32>
    %158 = arith.mulf %155, %155 : vector<8x1xf32>
    %159 = arith.subf %157, %158 : vector<8x1xf32>
    %cst_84 = arith.constant 9.99999974E-6 : f32
    %160 = vector.broadcast %cst_84 : f32 to vector<8x1xf32>
    %161 = arith.addf %159, %160 : vector<8x1xf32>
    %162 = math.rsqrt %161 : vector<8x1xf32>
    %163 = arith.mulf %4, %162 : vector<8x1xf32>
    %164 = arith.mulf %155, %163 : vector<8x1xf32>
    %165 = arith.subf %5, %164 : vector<8x1xf32>
    %166 = vector.extract_strided_slice %151 {offsets = [8, 0], sizes = [8, 1], strides = [1, 1]} : vector<32x1xf32> to vector<8x1xf32>
    %167 = vector.extract_strided_slice %151 {offsets = [24, 0], sizes = [8, 1], strides = [1, 1]} : vector<32x1xf32> to vector<8x1xf32>
    %cst_85 = arith.constant 0.001953125 : f32
    %168 = vector.broadcast %cst_85 : f32 to vector<8x1xf32>
    %169 = arith.mulf %166, %168 : vector<8x1xf32>
    %cst_86 = arith.constant 0.001953125 : f32
    %170 = vector.broadcast %cst_86 : f32 to vector<8x1xf32>
    %171 = arith.mulf %167, %170 : vector<8x1xf32>
    %172 = arith.mulf %169, %169 : vector<8x1xf32>
    %173 = arith.subf %171, %172 : vector<8x1xf32>
    %cst_87 = arith.constant 9.99999974E-6 : f32
    %174 = vector.broadcast %cst_87 : f32 to vector<8x1xf32>
    %175 = arith.addf %173, %174 : vector<8x1xf32>
    %176 = math.rsqrt %175 : vector<8x1xf32>
    %177 = arith.mulf %6, %176 : vector<8x1xf32>
    %178 = arith.mulf %169, %177 : vector<8x1xf32>
    %179 = arith.subf %7, %178 : vector<8x1xf32>
    %180 = vector.broadcast %163 : vector<8x1xf32> to vector<8x768xf32>
    %181 = arith.mulf %142, %180 : vector<8x768xf32>
    %182 = vector.broadcast %165 : vector<8x1xf32> to vector<8x768xf32>
    %183 = arith.addf %181, %182 : vector<8x768xf32>
    %184 = vector.broadcast %177 : vector<8x1xf32> to vector<8x768xf32>
    %185 = arith.mulf %62, %184 : vector<8x768xf32>
    %186 = vector.broadcast %179 : vector<8x1xf32> to vector<8x768xf32>
    %187 = arith.addf %185, %186 : vector<8x768xf32>
    %188 = arith.addf %183, %187 : vector<8x768xf32>
    %cst_88 = arith.constant 0.000000e+00 : f32
    %189 = vector.broadcast %cst_88 : f32 to vector<8x768xf32>
    %190 = arith.maximumf %188, %189 : vector<8x768xf32>
    %c767_i32_89 = arith.constant 767 : i32
    %191 = tpu.dynamic_rotate %190 by %c767_i32_89 dim 1 : vector<8x768xf32>, i32 -> vector<8x768xf32>
    %192 = arith.maximumf %190, %191 : vector<8x768xf32>
    %c750_i32_90 = arith.constant 750 : i32
    %193 = tpu.dynamic_rotate %192 by %c750_i32_90 dim 1 : vector<8x768xf32>, i32 -> vector<8x768xf32>
    %194 = arith.maximumf %192, %193 : vector<8x768xf32>
    %c0_91 = arith.constant 0 : index
    %c0_92 = arith.constant 0 : index
    %195 = vector.load %arg5[%c0_91, %c0_92] : memref<8x768xf32, #tpu.memory_space<vmem>>, vector<8x768xf32>
    tpu.vector_store %arg5[%c0_91, %c0_92], %194 {strides = array<i32>} : memref<8x768xf32, #tpu.memory_space<vmem>>, vector<8x768xf32>,
    return
  }
}

</mosaic_0001>

<bundles_post_ra>
// kernel: residual_block.1
= control target key start
LH: loop header
LB: loop body
LE: loop exit
PB: predicated region body
PF: predicated region fallthrough
CT: control target
= control target key end

     0   :  { %v4122_v3 = vmov 0   ;;  %s4123_s26 = smov 18   ;;  %s4124_s6 = smov 19   ;;  %v41_v10 = vlaneseq  ;;  %vm95_vm1 = vcmask 1043456   ;;  %vm91_vm2 = vcmask 64512   ;;  %s4992_s0 = inlined_call_operand.vmem [shape: f32[8,768], index: 0, kind: input, shape index: {}]   ;;  %s4993_s1 = inlined_call_operand.vmem [shape: bf16[9,16,8], index: 1, kind: input, shape index: {}]   ;;  %s4994_s4 = inlined_call_operand.vmem [shape: f32[1,768], index: 4, kind: input, shape index: {}]   ;;  %s4995_s3 = inlined_call_operand.vmem [shape: f32[8,6], index: 3, kind: input, shape index: {}]   ;;  %s4996_s2 = inlined_call_operand.vmem [shape: bf16[9,8,8], index: 2, kind: input, shape index: {}]   ;;  %s4997_s5 = inlined_call_operand.vmem [shape: f32[8,768], index: 5, kind: output, shape index: {}]  }
   0x1   :  { %v4169_v0 = vld [vmem:[%s4992_s0 + $0x10] sm:$0xff]  ;;  %v4174_v1 = vld [vmem:[%s4992_s0 + $0x18] sm:$0xff]  ;;  %v4179_v2 = vld [vmem:[%s4992_s0] sm:$0xff]  ;;  %146 = vmatprep.mubr.bf16.mxu0 %v4122_v3  ;;  %4020 = vset.pattern.permute.xlu1 %v4122_v3  ;;  %s4125_s7 = smov 17   ;;  %s4127_s8 = smov 127  }
   0x2   :  { %v3945_v4 = vpack.i.bf16 %v4174_v1, %v4169_v0  ;;  %v4188_v5 = vld [vmem:[%s4992_s0 + $0x8] sm:$0xff]  ;;  %1952 = vmatprep.mubr.bf16.mxu1 %v4122_v3  ;;  %v4197_v7 = vld [vmem:[%s4992_s0 + $0x20] sm:$0xff]  ;;  %s4128_s9 = smov 111   ;;  %s4129_s10 = smov 110   ;;  %v4254_v11 = vand.u32 127, %v41_v10 }
   0x3   :  { %v3940_v6 = vpack.i.bf16 %v4188_v5, %v4179_v2  ;;  %v4203_v8 = vld [vmem:[%s4992_s0 + $0x28] sm:$0xff]  ;;  %s4126_s0 = smov 1   ;;  %v3985_v9 = vpack.i.bf16 %v4197_v7, %v4174_v1  ;;  %s4130_s11 = smov 109   ;;  %v4108_v52 = vld [vmem:[%s4993_s1] sm:$0xff]  }
   0x4   :  { %3946 = vrot.lane.b32.xlu1 %v3945_v4, %s4123_s26  ;;  %vm70_vm0 = vcmp.lt.s32.totalorder %v4254_v11, 18  ;;  %v4107_v28 = vld [vmem:[%s4993_s1 + $0x8] sm:$0xff]   ;;  %vm43_vm3 = vcmp.lt.s32.totalorder %v4254_v11, 19  ;;  %vm410_vm4 = vcmp.lt.s32.totalorder %v4254_v11, 17  ;;  %vm605_vm5 = vcmp.lt.s32.totalorder %v4254_v11, 1 }
   0x5   :  { %3941 = vrot.lane.b32.xlu0 %v3940_v6, %s4123_s26  ;;  %vm976_vm6 = vcmp.lt.s32.totalorder %v4254_v11, 127  ;;  %vm1171_vm7 = vcmp.lt.s32.totalorder %v4254_v11, 111  ;;  %vm1366_vm8 = vcmp.lt.s32.totalorder %v4254_v11, 110  ;;  %vm1561_vm9 = vcmp.lt.s32.totalorder %v4254_v11, 109 }
   0x8   :  { %66 = vrot.lane.b32.xlu1 %v4197_v7, %s4123_s26 }
   0x9   :  { %68 = vrot.lane.b32.xlu0 %v4203_v8, %s4123_s26 }
   0xc   :  { %39 = vrot.lane.b32.xlu1 %v4203_v8, %s4124_s6 }
   0xd   :  { %3951 = vrot.lane.b32.xlu0 %v3940_v6, %s4124_s6 }
  0x10   :  { %37 = vrot.lane.b32.xlu1 %v4197_v7, %s4124_s6 }
  0x11   :  { %3956 = vrot.lane.b32.xlu0 %v3945_v4, %s4124_s6 }
  0x14   :  { %408 = vrot.lane.b32.xlu1 %v4203_v8, %s4125_s7 }
  0x15   :  { %3961 = vrot.lane.b32.xlu0 %v3940_v6, %s4125_s7 }
  0x18   :  { %406 = vrot.lane.b32.xlu1 %v4197_v7, %s4125_s7 }
  0x19   :  { %3966 = vrot.lane.b32.xlu0 %v3945_v4, %s4125_s7 }
  0x1c   :  { %603 = vrot.lane.b32.xlu1 %v4203_v8, %s4126_s0 }
  0x1d   :  { %3971 = vrot.lane.b32.xlu0 %v3940_v6, %s4126_s0 }
  0x20   :  { %601 = vrot.lane.b32.xlu1 %v4197_v7, %s4126_s0 }
  0x21   :  { %3976 = vrot.lane.b32.xlu0 %v3945_v4, %s4126_s0 }
  0x24   :  { %968 = vrot.lane.b32.xlu1 %v4169_v0, %s4127_s8 }
  0x25   :  { %3981 = vrot.lane.b32.xlu0 %v3940_v6, %s4127_s8 }
  0x28   :  { %974 = vrot.lane.b32.xlu1 %v4203_v8, %s4127_s8 }
  0x29   :  { %3986 = vrot.lane.b32.xlu0 %v3985_v9, %s4127_s8 }
  0x2c   :  { %1163 = vrot.lane.b32.xlu1 %v4169_v0, %s4128_s9 }
  0x2d   :  { %3991 = vrot.lane.b32.xlu0 %v3940_v6, %s4128_s9 }
  0x30   :  { %1169 = vrot.lane.b32.xlu1 %v4203_v8, %s4128_s9 }
  0x31   :  { %3996 = vrot.lane.b32.xlu0 %v3985_v9, %s4128_s9 }
  0x34   :  { %1358 = vrot.lane.b32.xlu1 %v4169_v0, %s4129_s10 }
  0x35   :  { %4001 = vrot.lane.b32.xlu0 %v3940_v6, %s4129_s10 }
  0x38   :  { %1364 = vrot.lane.b32.xlu1 %v4203_v8, %s4129_s10 }
  0x39   :  { %4006 = vrot.lane.b32.xlu0 %v3985_v9, %s4129_s10 }
  0x3c   :  { %1553 = vrot.lane.b32.xlu1 %v4169_v0, %s4130_s11 }
  0x3d   :  { %4011 = vrot.lane.b32.xlu0 %v3940_v6, %s4130_s11 }
  0x40   :  { %1559 = vrot.lane.b32.xlu1 %v4203_v8, %s4130_s11 }
  0x41   :  { %4016 = vrot.lane.b32.xlu0 %v3985_v9, %s4130_s11 }
  0x76   :  { %v3947_v12 = vpop.permute.xlu1 %3946 }
  0x77   :  { %v3949_v13 = vunpack.i.h.bf16 %v3947_v12  ;;  %v3942_v14 = vpop.permute.xlu0 %3941  ;;  %v3948_v15 = vunpack.i.l.bf16 %v3947_v12 }
  0x78   :  { %v3944_v16 = vunpack.i.h.bf16 %v3942_v14  ;;  %v3943_v17 = vunpack.i.l.bf16 %v3942_v14 }
  0x79   :  { %v73_v18 = vsel %vm70_vm0, %v3948_v15, %v3949_v13 }
  0x7a   :  { %v75_v19 = vsel %vm70_vm0, %v3943_v17, %v3944_v16  ;;  %v74_v23 = vsel %vm70_vm0, %v3944_v16, %v3948_v15  ;;  %v80_v24 = vpack.c.bf16 %v73_v18, %v73_v18  ;;  %v67_v25 = vpop.permute.xlu1 %66 }
  0x7b   :  { %v69_v20 = vpop.permute.xlu0 %68  ;;  %v78_v21 = vpack.c.bf16 %v75_v19, %v75_v19  ;;  %v79_v29 = vpack.c.bf16 %v74_v23, %v74_v23  ;;  %v72_v36 = vsel %vm70_vm0, %v3949_v13, %v67_v25 }
  0x7c   :  { %v76_v22 = vsel %vm70_vm0, %v69_v20, %v3943_v17  ;;  %v71_v30 = vsel %vm70_vm0, %v67_v25, %v69_v20  ;;  %v81_v38 = vpack.c.bf16 %v72_v36, %v72_v36 }
  0x7d   :  { %v77_v26 = vpack.c.bf16 %v76_v22, %v76_v22  ;;  %3596 = vmatprep.subr.msk.bf16.mxu0 %vm95_vm1, %v78_v21  ;;  %v82_v34 = vpack.c.bf16 %v71_v30, %v71_v30  ;;  %v103_v35 = vsel %vm95_vm1, %v79_v29, 0  ;;  %v4109_v21 = vld [vmem:[%s4993_s1 + $0x10] sm:$0xff]  }
  0x7e   :  { %v40_v40 = vpop.permute.xlu1 %39  ;;  %v109_v44 = vsel %vm95_vm1, %v81_v38, 0 }
  0x7f   :  { %v97_v27 = vsel %vm95_vm1, %v77_v26, 0  ;;  %v3952_v31 = vpop.permute.xlu0 %3951 }
  0x80   :  { %115 = vmatpush1.bf16.msra.mxu0 %v97_v27  ;;  %v3954_v32 = vunpack.i.h.bf16 %v3952_v31  ;;  %v3953_v33 = vunpack.i.l.bf16 %v3952_v31 }
  0x81   :  { %3598 = vmatprep.subr.msk.bf16.mxu0 %vm95_vm1, %v80_v24 }
  0x82   :  { %v48_v37 = vsel %vm43_vm3, %v3953_v33, %v3954_v32  ;;  %v49_v42 = vsel %vm43_vm3, %v40_v40, %v3953_v33  ;;  %v38_v51 = vpop.permute.xlu1 %37 }
  0x83   :  { %3597 = vmatmul.mubr.msk.bf16.vlgmr.msra.gmra.mrb[0].mxu0 %vm91_vm2, %v4107_v28  ;;  %v51_v39 = vpack.c.bf16 %v48_v37, %v48_v37  ;;  %v3957_v41 = vpop.permute.xlu0 %3956  ;;  %v50_v46 = vpack.c.bf16 %v49_v42, %v49_v42  ;;  %v44_v54 = vsel %vm43_vm3, %v38_v51, %v40_v40 }
  0x84   :  { %158 = vmatpush1.bf16.msra.mxu0 %v103_v35  ;;  %189 = vmatprep.mubr.bf16.mxu0 %v4122_v3  ;;  %v3959_v43 = vunpack.i.h.bf16 %v3957_v41  ;;  %v3958_v45 = vunpack.i.l.bf16 %v3957_v41  ;;  %v55_v58 = vpack.c.bf16 %v44_v54, %v44_v54  ;;  %v788_v54 = vpack.c.bf16 %v4179_v2, %v4179_v2 }
  0x85   :  { %3600 = vmatprep.subr.msk.bf16.mxu0 %vm95_vm1, %v82_v34  ;;  %v252_v49 = vsel %vm95_vm1, %v50_v46, 0 }
  0x86   :  { %v46_v47 = vsel %vm43_vm3, %v3958_v45, %v3959_v43  ;;  %v47_v50 = vsel %vm43_vm3, %v3954_v32, %v3958_v45  ;;  %v45_v60 = vsel %vm43_vm3, %v3959_v43, %v38_v51  ;;  %v409_v4 = vpop.permute.xlu1 %408  ;;  %v4110_v45 = vld [vmem:[%s4993_s1 + $0x18] sm:$0xff]  }
  0x87   :  { %v53_v48 = vpack.c.bf16 %v46_v47, %v46_v47  ;;  %v52_v53 = vpack.c.bf16 %v47_v50, %v47_v50  ;;  %v3962_v55 = vpop.permute.xlu0 %3961  ;;  %v54_v62 = vpack.c.bf16 %v45_v60, %v45_v60 }
  0x88   :  { %v3964_v56 = vunpack.i.h.bf16 %v3962_v55  ;;  %v3963_v57 = vunpack.i.l.bf16 %v3962_v55  ;;  %v806_v55 = vsel %vm95_vm1, %v788_v54, 0 }
  0x89   :  { %v258_v59 = vsel %vm95_vm1, %v52_v53, 0  ;;  %v264_v13 = vsel %vm95_vm1, %v54_v62, 0 }
  0x8a   :  { %v415_v61 = vsel %vm410_vm4, %v3963_v57, %v3964_v56  ;;  %v416_v9 = vsel %vm410_vm4, %v409_v4, %v3963_v57  ;;  %v407_v20 = vpop.permute.xlu1 %406  ;;  %v4111_v57 = vld [vmem:[%s4993_s1 + $0x20] sm:$0xff]  }
  0x8b   :  { %3599 = vmatmul.mubr.msk.bf16.vlgmr.msra.gmra.mrb[4].mxu0 %vm91_vm2, %v4107_v28  ;;  %v418_v63 = vpack.c.bf16 %v415_v61, %v415_v61  ;;  %v3967_v6 = vpop.permute.xlu0 %3966  ;;  %v417_v15 = vpack.c.bf16 %v416_v9, %v416_v9  ;;  %v411_v23 = vsel %vm410_vm4, %v407_v20, %v409_v4 }
  0x8c   :  { %201 = vmatpush1.bf16.msra.mxu0 %v109_v44  ;;  %232 = vmatprep.mubr.bf16.mxu0 %v4122_v3  ;;  %v3969_v12 = vunpack.i.h.bf16 %v3967_v6  ;;  %v3968_v14 = vunpack.i.l.bf16 %v3967_v6  ;;  %v422_v27 = vpack.c.bf16 %v411_v23, %v411_v23 }
  0x8d   :  { %3603 = vmatprep.subr.msk.bf16.mxu0 %vm95_vm1, %v51_v39  ;;  %v435_v18 = vsel %vm95_vm1, %v417_v15, 0 }
  0x8e   :  { %v413_v16 = vsel %vm410_vm4, %v3968_v14, %v3969_v12  ;;  %v414_v19 = vsel %vm410_vm4, %v3964_v56, %v3968_v14  ;;  %v412_v29 = vsel %vm410_vm4, %v3969_v12, %v407_v20  ;;  %v604_v33 = vpop.permute.xlu1 %603  ;;  %v791_v56 = vpack.c.bf16 %v4174_v1, %v4174_v1 }
  0x8f   :  { %v420_v17 = vpack.c.bf16 %v413_v16, %v413_v16  ;;  %v419_v22 = vpack.c.bf16 %v414_v19, %v414_v19  ;;  %v3972_v24 = vpop.permute.xlu0 %3971  ;;  %v421_v31 = vpack.c.bf16 %v412_v29, %v412_v29  ;;  %v793_v1 = vpack.c.bf16 %v4203_v8, %v4203_v8 }
  0x90   :  { %v3974_v25 = vunpack.i.h.bf16 %v3972_v24  ;;  %v3973_v26 = vunpack.i.l.bf16 %v3972_v24 }
  0x91   :  { %v447_v37 = vsel %vm95_vm1, %v421_v31, 0 }
  0x92   :  { %v610_v30 = vsel %vm605_vm5, %v3973_v26, %v3974_v25  ;;  %v611_v35 = vsel %vm605_vm5, %v604_v33, %v3973_v26  ;;  %v602_v44 = vpop.permute.xlu1 %601 }
  0x93   :  { %3601 = vmatmul.mubr.msk.bf16.vlgmr.msra.gmra.mrb[8].mxu0 %vm91_vm2, %v4107_v28  ;;  %v441_v28 = vsel %vm95_vm1, %v419_v22, 0  ;;  %v613_v32 = vpack.c.bf16 %v610_v30, %v610_v30  ;;  %v3977_v34 = vpop.permute.xlu0 %3976  ;;  %v612_v39 = vpack.c.bf16 %v611_v35, %v611_v35  ;;  %v606_v47 = vsel %vm605_vm5, %v602_v44, %v604_v33 }
  0x94   :  { %270 = vmatpush1.bf16.msra.mxu0 %v252_v49  ;;  %301 = vmatprep.mubr.bf16.mxu0 %v4122_v3  ;;  %v3979_v36 = vunpack.i.h.bf16 %v3977_v34  ;;  %v3978_v38 = vunpack.i.l.bf16 %v3977_v34 }
  0x95   :  { %3605 = vmatprep.subr.msk.bf16.mxu0 %vm95_vm1, %v53_v48  ;;  %v630_v42 = vsel %vm95_vm1, %v612_v39, 0  ;;  %v617_v48 = vpack.c.bf16 %v606_v47, %v606_v47 }
  0x96   :  { %v608_v40 = vsel %vm605_vm5, %v3978_v38, %v3979_v36  ;;  %v609_v43 = vsel %vm605_vm5, %v3974_v25, %v3978_v38  ;;  %v607_v50 = vsel %vm605_vm5, %v3979_v36, %v602_v44  ;;  %v969_v60 = vpop.permute.xlu1 %968 }
  0x97   :  { %v615_v41 = vpack.c.bf16 %v608_v40, %v608_v40  ;;  %v614_v46 = vpack.c.bf16 %v609_v43, %v609_v43  ;;  %v616_v51 = vpack.c.bf16 %v607_v50, %v607_v50 }
  0x99   :  { %v636_v49 = vsel %vm95_vm1, %v614_v46, 0  ;;  %v642_v53 = vsel %vm95_vm1, %v616_v51, 0 }
  0x9b   :  { %3604 = vmatmul.mubr.msk.bf16.vlgmr.msra.gmra.mrb[0].mxu0 %vm91_vm2, %v4108_v52 }
  0x9c   :  { %313 = vmatpush1.bf16.msra.mxu0 %v258_v59  ;;  %344 = vmatprep.mubr.bf16.mxu0 %v4122_v3 }
  0x9d   :  { %3607 = vmatprep.subr.msk.bf16.mxu0 %vm95_vm1, %v55_v58  ;;  %v3982_v58 = vpop.permute.xlu0 %3981 }
  0x9e   :  { %v3984_v59 = vunpack.i.h.bf16 %v3982_v58  ;;  %v3983_v61 = vunpack.i.l.bf16 %v3982_v58 }
  0xa0   :  { %v980_v62 = vsel %vm976_vm6, %v3984_v59, %v969_v60  ;;  %v981_v9 = vsel %vm976_vm6, %v3983_v61, %v3984_v59 }
  0xa1   :  { %v3987_v4 = vpop.permute.xlu0 %3986 }
  0xa2   :  { %v3989_v6 = vunpack.i.h.bf16 %v3987_v4  ;;  %v3988_v12 = vunpack.i.l.bf16 %v3987_v4 }
  0xa3   :  { %3606 = vmatmul.mubr.msk.bf16.vlgmr.msra.gmra.mrb[4].mxu0 %vm91_vm2, %v4108_v52 }
  0xa4   :  { %356 = vmatpush1.bf16.msra.mxu0 %v264_v13  ;;  %387 = vmatprep.mubr.bf16.mxu0 %v4122_v3  ;;  %v978_v13 = vsel %vm976_vm6, %v3988_v12, %v3989_v6  ;;  %v979_v16 = vsel %vm976_vm6, %v969_v60, %v3988_v12 }
  0xa5   :  { %3612 = vmatprep.subr.msk.bf16.mxu0 %vm95_vm1, %v418_v63  ;;  %v984_v63 = vpack.c.bf16 %v980_v62, %v980_v62  ;;  %v986_v14 = vpack.c.bf16 %v978_v13, %v978_v13  ;;  %v985_v19 = vpack.c.bf16 %v979_v16, %v979_v16  ;;  %v4114_v62 = vld [vmem:[%s4993_s1 + $0x38] sm:$0xff]  }
  0xa7   :  { %v1007_v24 = vsel %vm95_vm1, %v985_v19, 0 }
  0xab   :  { %3608 = vmatmul.mubr.msk.bf16.vlgmr.msra.gmra.mrb[8].mxu0 %vm91_vm2, %v4108_v52  ;;  %v789_v52 = vpack.c.bf16 %v4188_v5, %v4188_v5  ;;  %v790_v5 = vpack.c.bf16 %v4169_v0, %v4169_v0  ;;  %v792_v0 = vpack.c.bf16 %v4197_v7, %v4197_v7  ;;  %v983_v7 = vpack.c.bf16 %v981_v9, %v981_v9 }
  0xac   :  { %453 = vmatpush1.bf16.msra.mxu0 %v435_v18  ;;  %484 = vmatprep.mubr.bf16.mxu0 %v4122_v3  ;;  %v4112_v18 = vld [vmem:[%s4993_s1 + $0x28] sm:$0xff]  }
  0xad   :  { %3614 = vmatprep.subr.msk.bf16.mxu0 %vm95_vm1, %v420_v17  ;;  %v812_v2 = vsel %vm95_vm1, %v790_v5, 0  ;;  %v818_v8 = vsel %vm95_vm1, %v792_v0, 0  ;;  %v1001_v15 = vsel %vm95_vm1, %v983_v7, 0  ;;  %v975_v17 = vpop.permute.xlu1 %974 }
  0xae   :  { %v982_v20 = vsel %vm976_vm6, %v975_v17, %v3983_v61  ;;  %v977_v25 = vsel %vm976_vm6, %v3989_v6, %v975_v17 }
  0xaf   :  { %v988_v23 = vpack.c.bf16 %v982_v20, %v982_v20  ;;  %v987_v29 = vpack.c.bf16 %v977_v25, %v977_v25 }
  0xb1   :  { %v1164_v26 = vpop.permute.xlu1 %1163  ;;  %v1013_v34 = vsel %vm95_vm1, %v987_v29, 0  ;;  %v4115_v29 = vld [vmem:[%s4993_s1 + $0x40] sm:$0xff]  }
  0xb3   :  { %3613 = vmatmul.mubr.msk.bf16.vlgmr.msra.gmra.mrb[0].mxu0 %vm91_vm2, %v4109_v21 }
  0xb4   :  { %496 = vmatpush1.bf16.msra.mxu0 %v441_v28  ;;  %527 = vmatprep.mubr.bf16.mxu0 %v4122_v3 }
  0xb5   :  { %3616 = vmatprep.subr.msk.bf16.mxu0 %vm95_vm1, %v422_v27 }
  0xbb   :  { %3615 = vmatmul.mubr.msk.bf16.vlgmr.msra.gmra.mrb[4].mxu0 %vm91_vm2, %v4109_v21 }
  0xbc   :  { %539 = vmatpush1.bf16.msra.mxu0 %v447_v37  ;;  %570 = vmatprep.mubr.bf16.mxu0 %v4122_v3 }
  0xbd   :  { %3621 = vmatprep.subr.msk.bf16.mxu0 %vm95_vm1, %v613_v32 }
  0xc3   :  { %3617 = vmatmul.mubr.msk.bf16.vlgmr.msra.gmra.mrb[8].mxu0 %vm91_vm2, %v4109_v21  ;;  %v3992_v21 = vpop.permute.xlu0 %3991 }
  0xc4   :  { %648 = vmatpush1.bf16.msra.mxu0 %v630_v42  ;;  %679 = vmatprep.mubr.bf16.mxu0 %v4122_v3  ;;  %v3994_v22 = vunpack.i.h.bf16 %v3992_v21  ;;  %v3993_v27 = vunpack.i.l.bf16 %v3992_v21  ;;  %v4113_v42 = vld [vmem:[%s4993_s1 + $0x30] sm:$0xff]  }
  0xc5   :  { %3623 = vmatprep.subr.msk.bf16.mxu0 %vm95_vm1, %v615_v41  ;;  %v1170_v41 = vpop.permute.xlu1 %1169 }
  0xc6   :  { %v1175_v28 = vsel %vm1171_vm7, %v3994_v22, %v1164_v26  ;;  %v1176_v33 = vsel %vm1171_vm7, %v3993_v27, %v3994_v22  ;;  %v1177_v44 = vsel %vm1171_vm7, %v1170_v41, %v3993_v27 }
  0xc7   :  { %v1179_v30 = vpack.c.bf16 %v1175_v28, %v1175_v28  ;;  %v3997_v31 = vpop.permute.xlu0 %3996  ;;  %v1178_v36 = vpack.c.bf16 %v1176_v33, %v1176_v33  ;;  %v1183_v47 = vpack.c.bf16 %v1177_v44, %v1177_v44 }
  0xc8   :  { %v3999_v32 = vunpack.i.h.bf16 %v3997_v31  ;;  %v3998_v35 = vunpack.i.l.bf16 %v3997_v31 }
  0xc9   :  { %v1196_v39 = vsel %vm95_vm1, %v1178_v36, 0  ;;  %v1359_v50 = vpop.permute.xlu1 %1358 }
  0xca   :  { %v1173_v37 = vsel %vm1171_vm7, %v3998_v35, %v3999_v32  ;;  %v1174_v40 = vsel %vm1171_vm7, %v1164_v26, %v3998_v35 }
  0xcb   :  { %3622 = vmatmul.mubr.msk.bf16.vlgmr.msra.gmra.mrb[0].mxu0 %vm91_vm2, %v4110_v45  ;;  %v1181_v38 = vpack.c.bf16 %v1173_v37, %v1173_v37  ;;  %v1180_v43 = vpack.c.bf16 %v1174_v40, %v1174_v40  ;;  %v1746_v37 = vshrl.u32 %v41_v10, 7 }
  0xcc   :  { %691 = vmatpush1.bf16.msra.mxu0 %v636_v49  ;;  %722 = vmatprep.mubr.bf16.mxu0 %v4122_v3  ;;  %v1172_v49 = vsel %vm1171_vm7, %v3999_v32, %v1170_v41 }
  0xcd   :  { %3625 = vmatprep.subr.msk.bf16.mxu0 %vm95_vm1, %v617_v48  ;;  %v1202_v48 = vsel %vm95_vm1, %v1180_v43, 0  ;;  %v1365_v61 = vpop.permute.xlu1 %1364  ;;  %v1751_v40 = vsub.s32 1, %v1746_v37 }
  0xd1   :  { %v1554_v13 = vpop.permute.xlu1 %1553 }
  0xd3   :  { %3624 = vmatmul.mubr.msk.bf16.vlgmr.msra.gmra.mrb[4].mxu0 %vm91_vm2, %v4110_v45 }
  0xd4   :  { %734 = vmatpush1.bf16.msra.mxu0 %v642_v53  ;;  %765 = vmatprep.mubr.bf16.mxu0 %v4122_v3  ;;  %v1182_v53 = vpack.c.bf16 %v1172_v49, %v1172_v49 }
  0xd5   :  { %3630 = vmatprep.subr.msk.bf16.mxu0 %vm95_vm1, %v789_v52  ;;  %v1560_v28 = vpop.permute.xlu1 %1559 }
  0xdb   :  { %3626 = vmatmul.mubr.msk.bf16.vlgmr.msra.gmra.mrb[8].mxu0 %vm91_vm2, %v4110_v45  ;;  %v4002_v45 = vpop.permute.xlu0 %4001 }
  0xdc   :  { %824 = vmatpush1.bf16.msra.mxu0 %v806_v55  ;;  %855 = vmatprep.mubr.bf16.mxu0 %v4122_v3  ;;  %v4004_v46 = vunpack.i.h.bf16 %v4002_v45  ;;  %v4003_v51 = vunpack.i.l.bf16 %v4002_v45 }
  0xdd   :  { %3632 = vmatprep.subr.msk.bf16.mxu0 %vm95_vm1, %v791_v56 }
  0xde   :  { %v1370_v52 = vsel %vm1366_vm8, %v4004_v46, %v1359_v50  ;;  %v1371_v5 = vsel %vm1366_vm8, %v4003_v51, %v4004_v46  ;;  %v1755_v46 = vsub.s32 2, %v1746_v37 }
  0xdf   :  { %v1374_v54 = vpack.c.bf16 %v1370_v52, %v1370_v52  ;;  %v4007_v55 = vpop.permute.xlu0 %4006  ;;  %v1373_v58 = vpack.c.bf16 %v1371_v5, %v1371_v5 }
  0xe0   :  { %v4009_v56 = vunpack.i.h.bf16 %v4007_v55 }
  0xe1   :  { %v1391_v60 = vsel %vm95_vm1, %v1373_v58, 0 }
  0xe2   :  { %v1367_v7 = vsel %vm1366_vm8, %v4009_v56, %v1365_v61 }
  0xe3   :  { %3631 = vmatmul.mubr.msk.bf16.vlgmr.msra.gmra.mrb[0].mxu0 %vm91_vm2, %v4111_v57  ;;  %v4012_v4 = vpop.permute.xlu0 %4011  ;;  %v1377_v16 = vpack.c.bf16 %v1367_v7, %v1367_v7 }
  0xe4   :  { %867 = vmatpush1.bf16.msra.mxu0 %v812_v2  ;;  %898 = vmatprep.mubr.bf16.mxu0 %v4122_v3  ;;  %v4008_v2 = vunpack.i.l.bf16 %v4007_v55  ;;  %v4014_v6 = vunpack.i.h.bf16 %v4012_v4 }
  0xe5   :  { %3634 = vmatprep.subr.msk.bf16.mxu0 %vm95_vm1, %v793_v1  ;;  %v1403_v21 = vsel %vm95_vm1, %v1377_v16, 0 }
  0xe6   :  { %v1368_v1 = vsel %vm1366_vm8, %v4008_v2, %v4009_v56  ;;  %v1369_v0 = vsel %vm1366_vm8, %v1359_v50, %v4008_v2 }
  0xe7   :  { %v1376_v59 = vpack.c.bf16 %v1368_v1, %v1368_v1 }
  0xeb   :  { %3633 = vmatmul.mubr.msk.bf16.vlgmr.msra.gmra.mrb[4].mxu0 %vm91_vm2, %v4111_v57 }
  0xec   :  { %910 = vmatpush1.bf16.msra.mxu0 %v818_v8  ;;  %941 = vmatprep.mubr.bf16.mxu0 %v4122_v3  ;;  %v1372_v8 = vsel %vm1366_vm8, %v1365_v61, %v4003_v51 }
  0xed   :  { %3639 = vmatprep.subr.msk.bf16.mxu0 %vm95_vm1, %v984_v63  ;;  %v1375_v63 = vpack.c.bf16 %v1369_v0, %v1369_v0  ;;  %v1378_v9 = vpack.c.bf16 %v1372_v8, %v1372_v8  ;;  %v1767_v8 = vsub.s32 5, %v1746_v37 }
  0xef   :  { %v1397_v12 = vsel %vm95_vm1, %v1375_v63, 0 }
  0xf3   :  { %3635 = vmatmul.mubr.msk.bf16.vlgmr.msra.gmra.mrb[8].mxu0 %vm91_vm2, %v4111_v57  ;;  %v1208_v57 = vsel %vm95_vm1, %v1182_v53, 0 }
  0xf4   :  { %1019 = vmatpush1.bf16.msra.mxu0 %v1001_v15  ;;  %1050 = vmatprep.mubr.bf16.mxu0 %v4122_v3  ;;  %v1565_v15 = vsel %vm1561_vm9, %v4014_v6, %v1554_v13 }
  0xf5   :  { %3641 = vmatprep.subr.msk.bf16.mxu0 %vm95_vm1, %v986_v14  ;;  %v4013_v14 = vunpack.i.l.bf16 %v4012_v4  ;;  %v1569_v17 = vpack.c.bf16 %v1565_v15, %v1565_v15 }
  0xf7   :  { %v1566_v20 = vsel %vm1561_vm9, %v4013_v14, %v4014_v6  ;;  %v1567_v31 = vsel %vm1561_vm9, %v1560_v28, %v4013_v14 }
  0xf8   :  { %v1573_v32 = vpack.c.bf16 %v1567_v31, %v1567_v31 }
  0xfb   :  { %3640 = vmatmul.mubr.msk.bf16.vlgmr.msra.gmra.mrb[0].mxu0 %vm91_vm2, %v4112_v18 }
  0xfc   :  { %1062 = vmatpush1.bf16.msra.mxu0 %v1007_v24  ;;  %1093 = vmatprep.mubr.bf16.mxu0 %v4122_v3 }
  0xfd   :  { %3643 = vmatprep.subr.msk.bf16.mxu0 %vm95_vm1, %v988_v23  ;;  %v1568_v23 = vpack.c.bf16 %v1566_v20, %v1566_v20 }
  0xff   :  { %v1586_v26 = vsel %vm95_vm1, %v1568_v23, 0 }
 0x103   :  { %3642 = vmatmul.mubr.msk.bf16.vlgmr.msra.gmra.mrb[4].mxu0 %vm91_vm2, %v4112_v18 }
 0x104   :  { %1105 = vmatpush1.bf16.msra.mxu0 %v1013_v34  ;;  %1136 = vmatprep.mubr.bf16.mxu0 %v4122_v3 }
 0x105   :  { %3648 = vmatprep.subr.msk.bf16.mxu0 %vm95_vm1, %v1179_v30 }
 0x10b   :  { %3644 = vmatmul.mubr.msk.bf16.vlgmr.msra.gmra.mrb[8].mxu0 %vm91_vm2, %v4112_v18  ;;  %v4017_v18 = vpop.permute.xlu0 %4016 }
 0x10c   :  { %1214 = vmatpush1.bf16.msra.mxu0 %v1196_v39  ;;  %1245 = vmatprep.mubr.bf16.mxu0 %v4122_v3  ;;  %v4019_v19 = vunpack.i.h.bf16 %v4017_v18  ;;  %v4018_v22 = vunpack.i.l.bf16 %v4017_v18  ;;  %v21_v39 = vld [vmem:[%s4994_s4] sm:$0x3f] }
 0x10d   :  { %3650 = vmatprep.subr.msk.bf16.mxu0 %vm95_vm1, %v1181_v38  ;;  %v1747_v38 = vsub.s32 0, %v1746_v37  ;;  %v4530_v56 = vrot.slane %v21_v39, %v1755_v46  ;;  %v4552_v20 = vrot.slane %v21_v39, %v1767_v8 }
 0x10e   :  { %v1563_v24 = vsel %vm1561_vm9, %v4018_v22, %v4019_v19  ;;  %v1564_v27 = vsel %vm1561_vm9, %v1554_v13, %v4018_v22  ;;  %v1562_v34 = vsel %vm1561_vm9, %v4019_v19, %v1560_v28 }
 0x10f   :  { %v1571_v25 = vpack.c.bf16 %v1563_v24, %v1563_v24  ;;  %v1570_v30 = vpack.c.bf16 %v1564_v27, %v1564_v27  ;;  %v1572_v35 = vpack.c.bf16 %v1562_v34, %v1562_v34  ;;  %v4510_v41 = vrot.slane %v21_v39, %v1747_v38 }
 0x111   :  { %v1592_v33 = vsel %vm95_vm1, %v1570_v30, 0  ;;  %v1598_v36 = vsel %vm95_vm1, %v1572_v35, 0 }
 0x113   :  { %3649 = vmatmul.mubr.msk.bf16.vlgmr.msra.gmra.mrb[0].mxu0 %vm91_vm2, %v4113_v42 }
 0x114   :  { %1257 = vmatpush1.bf16.msra.mxu0 %v1202_v48  ;;  %1288 = vmatprep.mubr.bf16.mxu0 %v4122_v3  ;;  %v1759_v48 = vsub.s32 3, %v1746_v37 }
 0x115   :  { %3652 = vmatprep.subr.msk.bf16.mxu0 %vm95_vm1, %v1183_v47 }
 0x116   :  { %v4532_v58 = vrot.slane %v21_v39, %v1759_v48 }
 0x11b   :  { %3651 = vmatmul.mubr.msk.bf16.vlgmr.msra.gmra.mrb[4].mxu0 %vm91_vm2, %v4113_v42 }
 0x11c   :  { %1300 = vmatpush1.bf16.msra.mxu0 %v1208_v57  ;;  %1331 = vmatprep.mubr.bf16.mxu0 %v4122_v3 }
 0x11d   :  { %3657 = vmatprep.subr.msk.bf16.mxu0 %vm95_vm1, %v1374_v54 }
 0x123   :  { %3653 = vmatmul.mubr.msk.bf16.vlgmr.msra.gmra.mrb[8].mxu0 %vm91_vm2, %v4113_v42  ;;  %v4512_v42 = vrot.slane %v21_v39, %v1751_v40 }
 0x124   :  { %1409 = vmatpush1.bf16.msra.mxu0 %v1391_v60  ;;  %1440 = vmatprep.mubr.bf16.mxu0 %v4122_v3  ;;  %v1763_v60 = vsub.s32 4, %v1746_v37 }
 0x125   :  { %3659 = vmatprep.subr.msk.bf16.mxu0 %vm95_vm1, %v1376_v59 }
 0x126   :  { %v4550_v14 = vrot.slane %v21_v39, %v1763_v60 }
 0x12b   :  { %3658 = vmatmul.mubr.msk.bf16.vlgmr.msra.gmra.mrb[0].mxu0 %vm91_vm2, %v4114_v62 }
 0x12c   :  { %1452 = vmatpush1.bf16.msra.mxu0 %v1397_v12  ;;  %1483 = vmatprep.mubr.bf16.mxu0 %v4122_v3 }
 0x12d   :  { %3661 = vmatprep.subr.msk.bf16.mxu0 %vm95_vm1, %v1378_v9 }
 0x133   :  { %3660 = vmatmul.mubr.msk.bf16.vlgmr.msra.gmra.mrb[4].mxu0 %vm91_vm2, %v4114_v62 }
 0x134   :  { %1495 = vmatpush1.bf16.msra.mxu0 %v1403_v21  ;;  %1526 = vmatprep.mubr.bf16.mxu0 %v4122_v3 }
 0x135   :  { %3666 = vmatprep.subr.msk.bf16.mxu0 %vm95_vm1, %v1569_v17 }
 0x13b   :  { %3662 = vmatmul.mubr.msk.bf16.vlgmr.msra.gmra.mrb[8].mxu0 %vm91_vm2, %v4114_v62 }
 0x13c   :  { %1604 = vmatpush1.bf16.msra.mxu0 %v1586_v26  ;;  %1635 = vmatprep.mubr.bf16.mxu0 %v4122_v3 }
 0x13d   :  { %3668 = vmatprep.subr.msk.bf16.mxu0 %vm95_vm1, %v1571_v25 }
 0x143   :  { %3667 = vmatmul.mubr.msk.bf16.vlgmr.msra.gmra.mrb[0].mxu0 %vm91_vm2, %v4115_v29 }
 0x144   :  { %1647 = vmatpush1.bf16.msra.mxu0 %v1592_v33  ;;  %1678 = vmatprep.mubr.bf16.mxu0 %v4122_v3 }
 0x145   :  { %3670 = vmatprep.subr.msk.bf16.mxu0 %vm95_vm1, %v1573_v32 }
 0x14b   :  { %3669 = vmatmul.mubr.msk.bf16.vlgmr.msra.gmra.mrb[4].mxu0 %vm91_vm2, %v4115_v29 }
 0x14c   :  { %1690 = vmatpush1.bf16.msra.mxu0 %v1598_v36  ;;  %1721 = vmatprep.mubr.bf16.mxu0 %v4122_v3 }
 0x153   :  { %3671 = vmatmul.mubr.msk.bf16.vlgmr.msra.gmra.mrb[8].mxu0 %vm91_vm2, %v4115_v29 }
 0x216   :  { %v4514_v43 = vpop.f32.mrb[0].mxu0 }
 0x217   :  { %v1775_v44 = vmul.f32 %v4510_v41, %v4514_v43  ;;  %v4518_v45 = vpop.f32.mrb[1].mxu0 }
 0x218   :  { %v1776_v10 = vmul.f32 %v4512_v42, %v4518_v45  ;;  %v4522_v47 = vpop.f32.mrb[2].mxu0 }
 0x219   :  { %v1781_v49 = vmul.f32 %v1775_v44, %v1775_v44  ;;  %v3407_v50 = vmul.f32 %v4510_v41, %v4522_v47  ;;  %v4526_v51 = vpop.f32.mrb[3].mxu0 }
 0x21a   :  { %v1782_v52 = vmul.f32 %v1776_v10, %v1776_v10  ;;  %v1787_v53 = vadd.f32 %v1776_v10, %v1775_v44  ;;  %v3408_v54 = vmul.f32 %v4512_v42, %v4526_v51 }
 0x21b   :  { %v3419_v55 = vmul.f32 %v3407_v50, %v3407_v50 }
 0x21c   :  { %v1794_v5 = vadd.f32 %v1782_v52, %v1781_v49  ;;  %v3420_v57 = vmul.f32 %v3408_v54, %v3408_v54  ;;  %v3432_v2 = vadd.f32 %v3408_v54, %v3407_v50 }
 0x21e   :  { %v3446_v1 = vadd.f32 %v3420_v57, %v3419_v55  ;;  %v4534_v59 = vpop.f32.mrb[4].mxu0  ;;  %v4131_v57 = vmov 1  }
 0x21f   :  { %v1777_v0 = vmul.f32 %v4530_v56, %v4534_v59  ;;  %v4538_v61 = vpop.f32.mrb[5].mxu0  ;;  %4021 = vset.pattern.permute.xlu0 %v4131_v57 }
 0x220   :  { %v1778_v62 = vmul.f32 %v4532_v58, %v4538_v61  ;;  %v4542_v63 = vpop.f32.mrb[6].mxu0 }
 0x221   :  { %v1783_v4 = vmul.f32 %v1777_v0, %v1777_v0  ;;  %v1788_v6 = vadd.f32 %v1787_v53, %v1777_v0  ;;  %v3409_v9 = vmul.f32 %v4530_v56, %v4542_v63  ;;  %v4546_v12 = vpop.f32.mrb[7].mxu0 }
 0x222   :  { %v1784_v7 = vmul.f32 %v1778_v62, %v1778_v62  ;;  %v3410_v13 = vmul.f32 %v4532_v58, %v4546_v12 }
 0x223   :  { %v1795_v15 = vadd.f32 %v1794_v5, %v1783_v4  ;;  %v1789_v16 = vadd.f32 %v1788_v6, %v1778_v62  ;;  %v3421_v17 = vmul.f32 %v3409_v9, %v3409_v9  ;;  %v3433_v18 = vadd.f32 %v3432_v2, %v3409_v9  ;;  %v4571_v2 = vld [vmem:[%s4995_s3] sm:$0xff] }
 0x224   :  { %v3422_v19 = vmul.f32 %v3410_v13, %v3410_v13 }
 0x225   :  { %v3447_v21 = vadd.f32 %v3446_v1, %v3421_v17  ;;  %v3434_v22 = vadd.f32 %v3433_v18, %v3410_v13  ;;  %v1796_v23 = vadd.f32 %v1795_v15, %v1784_v7 }
 0x226   :  { %v1723_v24 = vpop.f32.mrb[8].mxu0 }
 0x227   :  { %v1779_v25 = vmul.f32 %v4550_v14, %v1723_v24  ;;  %v1725_v26 = vpop.f32.mrb[9].mxu0  ;;  %v3448_v27 = vadd.f32 %v3447_v21, %v3422_v19 }
 0x228   :  { %v1780_v28 = vmul.f32 %v4552_v20, %v1725_v26  ;;  %v4556_v29 = vpop.f32.mrb[10].mxu0 }
 0x229   :  { %v1785_v30 = vmul.f32 %v1779_v25, %v1779_v25  ;;  %v3411_v31 = vmul.f32 %v4550_v14, %v4556_v29  ;;  %v4560_v32 = vpop.f32.mrb[11].mxu0  ;;  %v1790_v33 = vadd.f32 %v1789_v16, %v1779_v25 }
 0x22a   :  { %v3412_v34 = vmul.f32 %v4552_v20, %v4560_v32  ;;  %v1786_v35 = vmul.f32 %v1780_v28, %v1780_v28 }
 0x22b   :  { %v3423_v36 = vmul.f32 %v3411_v31, %v3411_v31  ;;  %v1791_v37 = vadd.f32 %v1790_v33, %v1780_v28  ;;  %v1797_v38 = vadd.f32 %v1796_v23, %v1785_v30  ;;  %v3435_v39 = vadd.f32 %v3434_v22, %v3411_v31 }
 0x22c   :  { %v3424_v40 = vmul.f32 %v3412_v34, %v3412_v34 }
 0x22d   :  { %1792 = vadd.xlane.f32.xlu0 %v1791_v37  ;;  %v1798_v44 = vadd.f32 %v1797_v38, %v1786_v35  ;;  %v4564_v46 = vadd.f32 %v3435_v39, %v3412_v34  ;;  %v3449_v10 = vadd.f32 %v3448_v27, %v3423_v36 }
 0x22f   :  { %1799 = vadd.xlane.f32.xlu1 %v1798_v44  ;;  %v4566_v48 = vadd.f32 %v3449_v10, %v3424_v40 }
 0x2ba   :  { %v1793_v49 = vpop.xlane.xlu0 %1792 }
 0x2bb   :  { %v1801_v50 = vmul.f32 0.001953125, %v1793_v49 }
 0x2bc   :  { %v1800_v52 = vpop.xlane.xlu1 %1799 }
 0x2bd   :  { %v1803_v53 = vmul.f32 %v1801_v50, %v1801_v50  ;;  %v1802_v54 = vmul.f32 0.001953125, %v1800_v52 }
 0x2bf   :  { %v1804_v55 = vsub.f32 %v1802_v54, %v1803_v53 }
 0x2c1   :  { %v1805_v5 = vadd.f32 1e-05, %v1804_v55 }
 0x2c3   :  { %4116 = vrsqrt.f32 %v1805_v5 }
 0x2cd   :  { %v4117_v1 = vpop.eup %4116 }
 0x2ce   :  { %v1807_v60 = vmul.f32 %v4117_v1, %v4571_v2 }
 0x2d0   :  { %1816 = vperm.xlu1 %4020, %v1807_v60   ;;  %v1808_v0 = vmul.f32 %v1807_v60, %v1801_v50 }
 0x2d2   :  { %1810 = vrot.lane.b32.xlu0 %v1808_v0, %s4126_s0 }
 0x344   :  { %v1811_v62 = vpop.permute.xlu0 %1810 }
 0x345   :  { %v1813_v8 = vsub.f32 %v4571_v2, %v1811_v62 }
 0x347   :  { %1827 = vperm.xlu0 %4021, %v1813_v8   ;;  %v3672_v8 = vld [vmem:[%s4996_s2 + $0x4] sm:$0xf] }
 0x34f   :  { %v1817_v4 = vpop.permute.xlu1 %1816 }
 0x350   :  { %v1819_v6 = vmul.f32 %v1817_v4, %v4514_v43  ;;  %v1820_v9 = vmul.f32 %v1817_v4, %v4518_v45  ;;  %v1821_v7 = vmul.f32 %v1817_v4, %v4534_v59  ;;  %v1822_v13 = vmul.f32 %v1817_v4, %v4538_v61 }
 0x351   :  { %v1823_v15 = vmul.f32 %v1817_v4, %v1723_v24  ;;  %v1824_v16 = vmul.f32 %v1817_v4, %v1725_v26 }
 0x3c6   :  { %v1828_v17 = vpop.permute.xlu0 %1827 }
 0x3c7   :  { %v1830_v18 = vadd.f32 %v1828_v17, %v1819_v6  ;;  %v1831_v19 = vadd.f32 %v1828_v17, %v1820_v9  ;;  %v1832_v21 = vadd.f32 %v1828_v17, %v1821_v7  ;;  %v1833_v22 = vadd.f32 %v1828_v17, %v1822_v13 }
 0x3c8   :  { %v1834_v23 = vadd.f32 %v1828_v17, %v1823_v15  ;;  %v1835_v25 = vadd.f32 %v1828_v17, %v1824_v16 }
 0x3c9   :  { %v1836_v27 = vmax.f32 %v1830_v18, 0.0  ;;  %v1837_v28 = vmax.f32 %v1831_v19, 0.0  ;;  %v1838_v30 = vmax.f32 %v1832_v21, 0.0  ;;  %v1839_v31 = vmax.f32 %v1833_v22, 0.0 }
 0x3ca   :  { %v1840_v43 = vmax.f32 %v1834_v23, 0.0  ;;  %v1841_v26 = vmax.f32 %v1835_v25, 0.0 }
 0x3cb   :  { %v4581_v45 = vmul.f32 %v1836_v27, %v4510_v41  ;;  %v4584_v59 = vmul.f32 %v1837_v28, %v4512_v42  ;;  %v4587_v61 = vmul.f32 %v1838_v30, %v4530_v56  ;;  %v4590_v24 = vmul.f32 %v1839_v31, %v4532_v58 }
 0x3cc   :  { %v4593_v33 = vmul.f32 %v1840_v43, %v4550_v14  ;;  %v4604_v37 = vmul.f32 %v1841_v26, %v4552_v20 }
 0x3cd   :  { %v4027_v34 = vpack.i.bf16 %v4590_v24, %v4587_v61  ;;  %v4022_v35 = vpack.i.bf16 %v4584_v59, %v4581_v45 }
 0x3ce   :  { %v4067_v36 = vpack.i.bf16 %v4593_v33, %v4590_v24 }
 0x3cf   :  { %4028 = vrot.lane.b32.xlu0 %v4027_v34, %s4123_s26  ;;  %4023 = vrot.lane.b32.xlu1 %v4022_v35, %s4123_s26 }
 0x3d3   :  { %4033 = vrot.lane.b32.xlu0 %v4022_v35, %s4124_s6  ;;  %1883 = vrot.lane.b32.xlu1 %v4604_v37, %s4123_s26 }
 0x3d7   :  { %4038 = vrot.lane.b32.xlu0 %v4027_v34, %s4124_s6  ;;  %1881 = vrot.lane.b32.xlu1 %v4593_v33, %s4123_s26 }
 0x3db   :  { %4043 = vrot.lane.b32.xlu0 %v4022_v35, %s4125_s7  ;;  %1858 = vrot.lane.b32.xlu1 %v4604_v37, %s4124_s6 }
 0x3df   :  { %4048 = vrot.lane.b32.xlu0 %v4027_v34, %s4125_s7  ;;  %1856 = vrot.lane.b32.xlu1 %v4593_v33, %s4124_s6 }
 0x3e3   :  { %4053 = vrot.lane.b32.xlu0 %v4022_v35, %s4126_s0  ;;  %2197 = vrot.lane.b32.xlu1 %v4604_v37, %s4125_s7 }
 0x3e7   :  { %4058 = vrot.lane.b32.xlu0 %v4027_v34, %s4126_s0  ;;  %2195 = vrot.lane.b32.xlu1 %v4593_v33, %s4125_s7 }
 0x3eb   :  { %4063 = vrot.lane.b32.xlu0 %v4022_v35, %s4127_s8  ;;  %2373 = vrot.lane.b32.xlu1 %v4604_v37, %s4126_s0 }
 0x3ef   :  { %4068 = vrot.lane.b32.xlu0 %v4067_v36, %s4127_s8  ;;  %2371 = vrot.lane.b32.xlu1 %v4593_v33, %s4126_s0 }
 0x3f3   :  { %4073 = vrot.lane.b32.xlu0 %v4022_v35, %s4128_s9  ;;  %2701 = vrot.lane.b32.xlu1 %v4587_v61, %s4127_s8 }
 0x3f7   :  { %4078 = vrot.lane.b32.xlu0 %v4067_v36, %s4128_s9  ;;  %2707 = vrot.lane.b32.xlu1 %v4604_v37, %s4127_s8 }
 0x3fb   :  { %4083 = vrot.lane.b32.xlu0 %v4022_v35, %s4129_s10  ;;  %2877 = vrot.lane.b32.xlu1 %v4587_v61, %s4128_s9 }
 0x3ff   :  { %4088 = vrot.lane.b32.xlu0 %v4067_v36, %s4129_s10  ;;  %2883 = vrot.lane.b32.xlu1 %v4604_v37, %s4128_s9 }
 0x403   :  { %4093 = vrot.lane.b32.xlu0 %v4022_v35, %s4130_s11  ;;  %3053 = vrot.lane.b32.xlu1 %v4587_v61, %s4129_s10 }
 0x407   :  { %4098 = vrot.lane.b32.xlu0 %v4067_v36, %s4130_s11  ;;  %3059 = vrot.lane.b32.xlu1 %v4604_v37, %s4129_s10 }
 0x40b   :  { %3229 = vrot.lane.b32.xlu1 %v4587_v61, %s4130_s11 }
 0x40f   :  { %3235 = vrot.lane.b32.xlu1 %v4604_v37, %s4130_s11 }
 0x433   :  { %3437 = vadd.xlane.f32.xlu1 %v4564_v46 }
 0x441   :  { %v4029_v38 = vpop.permute.xlu0 %4028  ;;  %v4024_v39 = vpop.permute.xlu1 %4023 }
 0x442   :  { %v4031_v40 = vunpack.i.h.bf16 %v4029_v38  ;;  %v4030_v44 = vunpack.i.l.bf16 %v4029_v38  ;;  %v4026_v10 = vunpack.i.h.bf16 %v4024_v39  ;;  %v4025_v49 = vunpack.i.l.bf16 %v4024_v39  ;;  %v1872_v38 = vld [vmem:[%s4996_s2] sm:$0xf] }
 0x444   :  { %v1889_v50 = vsel %vm70_vm0, %v4025_v49, %v4026_v10  ;;  %v1887_v54 = vsel %vm70_vm0, %v4030_v44, %v4031_v40  ;;  %v1888_v46 = vsel %vm70_vm0, %v4026_v10, %v4030_v44 }
 0x445   :  { %v1884_v52 = vpop.permute.xlu1 %1883  ;;  %v1892_v53 = vpack.c.bf16 %v1889_v50, %v1889_v50  ;;  %v1894_v57 = vpack.c.bf16 %v1887_v54, %v1887_v54  ;;  %v1893_v0 = vpack.c.bf16 %v1888_v46, %v1888_v46  ;;  %v4034_v4 = vpop.permute.xlu0 %4033 }
 0x446   :  { %v1890_v55 = vsel %vm70_vm0, %v1884_v52, %v4025_v49  ;;  %v4036_v7 = vunpack.i.h.bf16 %v4034_v4  ;;  %v4035_v13 = vunpack.i.l.bf16 %v4034_v4 }
 0x447   :  { %v1891_v5 = vpack.c.bf16 %v1890_v55, %v1890_v55  ;;  %3673 = vmatprep.subr.msk.bf16.mxu1 %vm95_vm1, %v1892_v53  ;;  %v1909_v9 = vsel %vm95_vm1, %v1893_v0, 0 }
 0x448   :  { %v1864_v17 = vsel %vm43_vm3, %v4035_v13, %v4036_v7 }
 0x449   :  { %v1882_v1 = vpop.permute.xlu1 %1881  ;;  %v1903_v60 = vsel %vm95_vm1, %v1891_v5, 0  ;;  %v4039_v18 = vpop.permute.xlu0 %4038  ;;  %v1867_v21 = vpack.c.bf16 %v1864_v17, %v1864_v17 }
 0x44a   :  { %v1885_v62 = vsel %vm70_vm0, %v1882_v1, %v1884_v52  ;;  %1921 = vmatpush1.bf16.msra.mxu1 %v1903_v60  ;;  %v1886_v15 = vsel %vm70_vm0, %v4031_v40, %v1882_v1  ;;  %v4041_v23 = vunpack.i.h.bf16 %v4039_v18  ;;  %v4040_v25 = vunpack.i.l.bf16 %v4039_v18 }
 0x44b   :  { %3675 = vmatprep.subr.msk.bf16.mxu1 %vm95_vm1, %v1894_v57  ;;  %v1896_v6 = vpack.c.bf16 %v1885_v62, %v1885_v62  ;;  %v1895_v16 = vpack.c.bf16 %v1886_v15, %v1886_v15  ;;  %v3685_v15 = vld [vmem:[%s4996_s2 + $0x8] sm:$0xf] }
 0x44c   :  { %v1862_v30 = vsel %vm43_vm3, %v4040_v25, %v4041_v23  ;;  %v1863_v26 = vsel %vm43_vm3, %v4036_v7, %v4040_v25 }
 0x44d   :  { %3674 = vmatmul.mubr.msk.bf16.vlgmr.msra.gmra.mrb[0].mxu1 %vm91_vm2, %v3672_v8  ;;  %v1859_v19 = vpop.permute.xlu1 %1858  ;;  %v1915_v22 = vsel %vm95_vm1, %v1895_v16, 0  ;;  %v1869_v31 = vpack.c.bf16 %v1862_v30, %v1862_v30  ;;  %v1868_v35 = vpack.c.bf16 %v1863_v26, %v1863_v26  ;;  %v4044_v39 = vpop.permute.xlu0 %4043 }
 0x44e   :  { %1962 = vmatpush1.bf16.msra.mxu1 %v1909_v9  ;;  %1993 = vmatprep.mubr.bf16.mxu1 %v4122_v3  ;;  %v1865_v27 = vsel %vm43_vm3, %v1859_v19, %v4035_v13  ;;  %v4046_v10 = vunpack.i.h.bf16 %v4044_v39  ;;  %v4045_v49 = vunpack.i.l.bf16 %v4044_v39 }
 0x44f   :  { %3677 = vmatprep.subr.msk.bf16.mxu1 %vm95_vm1, %v1896_v6  ;;  %v1866_v28 = vpack.c.bf16 %v1865_v27, %v1865_v27  ;;  %v2053_v44 = vsel %vm95_vm1, %v1868_v35, 0 }
 0x450   :  { %v2203_v53 = vsel %vm410_vm4, %v4045_v49, %v4046_v10 }
 0x451   :  { %v2047_v43 = vsel %vm95_vm1, %v1866_v28, 0  ;;  %v1857_v34 = vpop.permute.xlu1 %1856  ;;  %v4049_v54 = vpop.permute.xlu0 %4048  ;;  %v2206_v46 = vpack.c.bf16 %v2203_v53, %v2203_v53 }
 0x452   :  { %v1860_v36 = vsel %vm43_vm3, %v1857_v34, %v1859_v19  ;;  %v1861_v50 = vsel %vm43_vm3, %v4041_v23, %v1857_v34  ;;  %v4051_v57 = vunpack.i.h.bf16 %v4049_v54  ;;  %v4050_v1 = vunpack.i.l.bf16 %v4049_v54 }
 0x453   :  { %v1871_v40 = vpack.c.bf16 %v1860_v36, %v1860_v36  ;;  %v1870_v52 = vpack.c.bf16 %v1861_v50, %v1861_v50  ;;  %v3692_v50 = vld [vmem:[%s4996_s2 + $0xc] sm:$0xf] }
 0x454   :  { %v2201_v62 = vsel %vm410_vm4, %v4050_v1, %v4051_v57  ;;  %v2202_v6 = vsel %vm410_vm4, %v4046_v10, %v4050_v1 }
 0x455   :  { %3676 = vmatmul.mubr.msk.bf16.vlgmr.msra.gmra.mrb[4].mxu1 %vm91_vm2, %v3672_v8  ;;  %v2198_v55 = vpop.permute.xlu1 %2197  ;;  %v2059_v5 = vsel %vm95_vm1, %v1870_v52, 0  ;;  %v2207_v7 = vpack.c.bf16 %v2202_v6, %v2202_v6  ;;  %v4054_v16 = vpop.permute.xlu0 %4053 }
 0x456   :  { %2003 = vmatpush1.bf16.msra.mxu1 %v1915_v22  ;;  %2034 = vmatprep.mubr.bf16.mxu1 %v4122_v3  ;;  %v2204_v60 = vsel %vm410_vm4, %v2198_v55, %v4045_v49  ;;  %v4056_v19 = vunpack.i.h.bf16 %v4054_v16 }
 0x457   :  { %3679 = vmatprep.subr.msk.bf16.mxu1 %vm95_vm1, %v1867_v21  ;;  %v2205_v0 = vpack.c.bf16 %v2204_v60, %v2204_v60  ;;  %v2223_v18 = vsel %vm95_vm1, %v2207_v7, 0  ;;  %v4055_v21 = vunpack.i.l.bf16 %v4054_v16  ;;  %v2542_v60 = vpack.c.bf16 %v4590_v24, %v4590_v24 }
 0x458   :  { %v2544_v24 = vpack.c.bf16 %v4604_v37, %v4604_v37 }
 0x459   :  { %v2217_v4 = vsel %vm95_vm1, %v2205_v0, 0  ;;  %v2196_v9 = vpop.permute.xlu1 %2195  ;;  %v2379_v25 = vsel %vm605_vm5, %v4055_v21, %v4056_v19  ;;  %v4059_v27 = vpop.permute.xlu0 %4058  ;;  %v3699_v0 = vld [vmem:[%s4996_s2 + $0x10] sm:$0xf] }
 0x45a   :  { %v2199_v13 = vsel %vm410_vm4, %v2196_v9, %v2198_v55  ;;  %v2200_v22 = vsel %vm410_vm4, %v4051_v57, %v2196_v9  ;;  %v2382_v30 = vpack.c.bf16 %v2379_v25, %v2379_v25  ;;  %v4060_v26 = vunpack.i.l.bf16 %v4059_v27 }
 0x45b   :  { %v2210_v17 = vpack.c.bf16 %v2199_v13, %v2199_v13  ;;  %v2209_v23 = vpack.c.bf16 %v2200_v22, %v2200_v22  ;;  %v2539_v57 = vpack.c.bf16 %v4581_v45, %v4581_v45 }
 0x45d   :  { %3678 = vmatmul.mubr.msk.bf16.vlgmr.msra.gmra.mrb[8].mxu1 %vm91_vm2, %v3672_v8  ;;  %v2208_v8 = vpack.c.bf16 %v2201_v62, %v2201_v62  ;;  %v2374_v28 = vpop.permute.xlu1 %2373  ;;  %v2551_v1 = vsel %vm95_vm1, %v2539_v57, 0  ;;  %v4064_v45 = vpop.permute.xlu0 %4063 }
 0x45e   :  { %2065 = vmatpush1.bf16.msra.mxu1 %v2047_v43  ;;  %2096 = vmatprep.mubr.bf16.mxu1 %v4122_v3  ;;  %v4061_v43 = vunpack.i.h.bf16 %v4059_v27  ;;  %v2380_v34 = vsel %vm605_vm5, %v2374_v28, %v4055_v21  ;;  %v4065_v6 = vunpack.i.l.bf16 %v4064_v45 }
 0x45f   :  { %3681 = vmatprep.subr.msk.bf16.mxu1 %vm95_vm1, %v1869_v31  ;;  %v2229_v31 = vsel %vm95_vm1, %v2209_v23, 0  ;;  %v2381_v35 = vpack.c.bf16 %v2380_v34, %v2380_v34 }
 0x460   :  { %v2377_v36 = vsel %vm605_vm5, %v4060_v26, %v4061_v43 }
 0x461   :  { %v2393_v39 = vsel %vm95_vm1, %v2381_v35, 0  ;;  %v4069_v7 = vpop.permute.xlu0 %4068 }
 0x462   :  { %v4070_v16 = vunpack.i.l.bf16 %v4069_v7 }
 0x465   :  { %3680 = vmatmul.mubr.msk.bf16.vlgmr.msra.gmra.mrb[0].mxu1 %vm91_vm2, %v1872_v38 }
 0x466   :  { %2106 = vmatpush1.bf16.msra.mxu1 %v2053_v44  ;;  %2137 = vmatprep.mubr.bf16.mxu1 %v4122_v3  ;;  %v2372_v44 = vpop.permute.xlu1 %2371 }
 0x467   :  { %3683 = vmatprep.subr.msk.bf16.mxu1 %vm95_vm1, %v1871_v40  ;;  %v2378_v40 = vsel %vm605_vm5, %v4056_v19, %v4060_v26  ;;  %v2375_v49 = vsel %vm605_vm5, %v2372_v44, %v2374_v28  ;;  %v2376_v54 = vsel %vm605_vm5, %v4061_v43, %v2372_v44  ;;  %v3706_v28 = vld [vmem:[%s4996_s2 + $0x14] sm:$0xf] }
 0x468   :  { %v2383_v10 = vpack.c.bf16 %v2378_v40, %v2378_v40  ;;  %v2386_v52 = vpack.c.bf16 %v2375_v49, %v2375_v49  ;;  %v2385_v55 = vpack.c.bf16 %v2376_v54, %v2376_v54 }
 0x46a   :  { %v2399_v53 = vsel %vm95_vm1, %v2383_v10, 0 }
 0x46d   :  { %3682 = vmatmul.mubr.msk.bf16.vlgmr.msra.gmra.mrb[4].mxu1 %vm91_vm2, %v1872_v38 }
 0x46e   :  { %2147 = vmatpush1.bf16.msra.mxu1 %v2059_v5  ;;  %2178 = vmatprep.mubr.bf16.mxu1 %v4122_v3  ;;  %v2540_v5 = vpack.c.bf16 %v4584_v59, %v4584_v59  ;;  %v2541_v59 = vpack.c.bf16 %v4587_v61, %v4587_v61  ;;  %v2543_v61 = vpack.c.bf16 %v4593_v33, %v4593_v33 }
 0x46f   :  { %3686 = vmatprep.subr.msk.bf16.mxu1 %vm95_vm1, %v2206_v46  ;;  %v2405_v46 = vsel %vm95_vm1, %v2385_v55, 0 }
 0x470   :  { %v2557_v62 = vsel %vm95_vm1, %v2541_v59, 0  ;;  %v2563_v37 = vsel %vm95_vm1, %v2543_v61, 0  ;;  %v3713_v59 = vld [vmem:[%s4996_s2 + $0x18] sm:$0xf] }
 0x475   :  { %3684 = vmatmul.mubr.msk.bf16.vlgmr.msra.gmra.mrb[8].mxu1 %vm91_vm2, %v1872_v38  ;;  %v2384_v38 = vpack.c.bf16 %v2377_v36, %v2377_v36 }
 0x476   :  { %2235 = vmatpush1.bf16.msra.mxu1 %v2217_v4  ;;  %2266 = vmatprep.mubr.bf16.mxu1 %v4122_v3  ;;  %v4066_v4 = vunpack.i.h.bf16 %v4064_v45 }
 0x477   :  { %3688 = vmatprep.subr.msk.bf16.mxu1 %vm95_vm1, %v2208_v8  ;;  %v2702_v8 = vpop.permute.xlu1 %2701 }
 0x478   :  { %v2712_v9 = vsel %vm976_vm6, %v4066_v4, %v2702_v8  ;;  %v2711_v22 = vsel %vm976_vm6, %v2702_v8, %v4070_v16 }
 0x479   :  { %v2716_v13 = vpack.c.bf16 %v2712_v9, %v2712_v9  ;;  %v2717_v25 = vpack.c.bf16 %v2711_v22, %v2711_v22 }
 0x47b   :  { %v2708_v23 = vpop.permute.xlu1 %2707  ;;  %v2733_v43 = vsel %vm95_vm1, %v2717_v25, 0 }
 0x47c   :  { %v2714_v27 = vsel %vm976_vm6, %v2708_v23, %v4065_v6 }
 0x47d   :  { %3687 = vmatmul.mubr.msk.bf16.vlgmr.msra.gmra.mrb[0].mxu1 %vm91_vm2, %v3685_v15 }
 0x47e   :  { %2276 = vmatpush1.bf16.msra.mxu1 %v2223_v18  ;;  %2307 = vmatprep.mubr.bf16.mxu1 %v4122_v3 }
 0x47f   :  { %3690 = vmatprep.subr.msk.bf16.mxu1 %vm95_vm1, %v2210_v17  ;;  %v2713_v17 = vsel %vm976_vm6, %v4065_v6, %v4066_v4  ;;  %v2878_v34 = vpop.permute.xlu1 %2877 }
 0x480   :  { %v2715_v33 = vpack.c.bf16 %v2713_v17, %v2713_v17 }
 0x482   :  { %v2727_v21 = vsel %vm95_vm1, %v2715_v33, 0 }
 0x483   :  { %v2884_v57 = vpop.permute.xlu1 %2883 }
 0x485   :  { %3689 = vmatmul.mubr.msk.bf16.vlgmr.msra.gmra.mrb[4].mxu1 %vm91_vm2, %v3685_v15 }
 0x486   :  { %2317 = vmatpush1.bf16.msra.mxu1 %v2229_v31  ;;  %2348 = vmatprep.mubr.bf16.mxu1 %v4122_v3  ;;  %v2720_v31 = vpack.c.bf16 %v2714_v27, %v2714_v27 }
 0x487   :  { %3693 = vmatprep.subr.msk.bf16.mxu1 %vm95_vm1, %v2382_v30  ;;  %v4074_v30 = vpop.permute.xlu0 %4073  ;;  %v3054_v8 = vpop.permute.xlu1 %3053 }
 0x488   :  { %v4076_v35 = vunpack.i.h.bf16 %v4074_v30 }
 0x48b   :  { %v4079_v40 = vpop.permute.xlu0 %4078 }
 0x48c   :  { %v4081_v49 = vunpack.i.h.bf16 %v4079_v40 }
 0x48d   :  { %3691 = vmatmul.mubr.msk.bf16.vlgmr.msra.gmra.mrb[8].mxu1 %vm91_vm2, %v3685_v15  ;;  %v4071_v15 = vunpack.i.h.bf16 %v4069_v7 }
 0x48e   :  { %2411 = vmatpush1.bf16.msra.mxu1 %v2393_v39  ;;  %2442 = vmatprep.mubr.bf16.mxu1 %v4122_v3  ;;  %v2888_v39 = vsel %vm1171_vm7, %v4076_v35, %v2878_v34 }
 0x48f   :  { %3695 = vmatprep.subr.msk.bf16.mxu1 %vm95_vm1, %v2384_v38  ;;  %v2710_v18 = vsel %vm976_vm6, %v4070_v16, %v4071_v15  ;;  %v2709_v26 = vsel %vm976_vm6, %v4071_v15, %v2708_v23  ;;  %v4075_v38 = vunpack.i.l.bf16 %v4074_v30  ;;  %v2892_v44 = vpack.c.bf16 %v2888_v39, %v2888_v39  ;;  %v3060_v23 = vpop.permute.xlu1 %3059 }
 0x490   :  { %v2718_v19 = vpack.c.bf16 %v2710_v18, %v2710_v18  ;;  %v2719_v36 = vpack.c.bf16 %v2709_v26, %v2709_v26 }
 0x492   :  { %v2739_v10 = vsel %vm95_vm1, %v2719_v36, 0 }
 0x495   :  { %3694 = vmatmul.mubr.msk.bf16.vlgmr.msra.gmra.mrb[0].mxu1 %vm91_vm2, %v3692_v50 }
 0x496   :  { %2452 = vmatpush1.bf16.msra.mxu1 %v2399_v53  ;;  %2483 = vmatprep.mubr.bf16.mxu1 %v4122_v3 }
 0x497   :  { %3697 = vmatprep.subr.msk.bf16.mxu1 %vm95_vm1, %v2386_v52  ;;  %v2889_v52 = vsel %vm1171_vm7, %v4075_v38, %v4076_v35 }
 0x498   :  { %v2891_v53 = vpack.c.bf16 %v2889_v52, %v2889_v52 }
 0x49d   :  { %3696 = vmatmul.mubr.msk.bf16.vlgmr.msra.gmra.mrb[4].mxu1 %vm91_vm2, %v3692_v50 }
 0x49e   :  { %2493 = vmatpush1.bf16.msra.mxu1 %v2405_v46  ;;  %2524 = vmatprep.mubr.bf16.mxu1 %v4122_v3  ;;  %v2903_v46 = vsel %vm95_vm1, %v2891_v53, 0 }
 0x49f   :  { %3700 = vmatprep.subr.msk.bf16.mxu1 %vm95_vm1, %v2540_v5 }
 0x4a5   :  { %3698 = vmatmul.mubr.msk.bf16.vlgmr.msra.gmra.mrb[8].mxu1 %vm91_vm2, %v3692_v50  ;;  %v4080_v50 = vunpack.i.l.bf16 %v4079_v40 }
 0x4a6   :  { %2569 = vmatpush1.bf16.msra.mxu1 %v2551_v1  ;;  %2600 = vmatprep.mubr.bf16.mxu1 %v4122_v3 }
 0x4a7   :  { %3702 = vmatprep.subr.msk.bf16.mxu1 %vm95_vm1, %v2542_v60  ;;  %v2886_v54 = vsel %vm1171_vm7, %v4080_v50, %v4081_v49  ;;  %v2887_v5 = vsel %vm1171_vm7, %v2878_v34, %v4080_v50  ;;  %v2890_v60 = vsel %vm1171_vm7, %v2884_v57, %v4075_v38  ;;  %v3230_v34 = vpop.permute.xlu1 %3229 }
 0x4a8   :  { %v2894_v55 = vpack.c.bf16 %v2886_v54, %v2886_v54  ;;  %v2893_v1 = vpack.c.bf16 %v2887_v5, %v2887_v5  ;;  %v2896_v45 = vpack.c.bf16 %v2890_v60, %v2890_v60 }
 0x4ad   :  { %3701 = vmatmul.mubr.msk.bf16.vlgmr.msra.gmra.mrb[0].mxu1 %vm91_vm2, %v3699_v0 }
 0x4ae   :  { %2610 = vmatpush1.bf16.msra.mxu1 %v2557_v62  ;;  %2641 = vmatprep.mubr.bf16.mxu1 %v4122_v3  ;;  %v2909_v62 = vsel %vm95_vm1, %v2893_v1, 0 }
 0x4af   :  { %3704 = vmatprep.subr.msk.bf16.mxu1 %vm95_vm1, %v2544_v24  ;;  %v2885_v24 = vsel %vm1171_vm7, %v4081_v49, %v2884_v57  ;;  %v3236_v57 = vpop.permute.xlu1 %3235 }
 0x4b0   :  { %v2895_v61 = vpack.c.bf16 %v2885_v24, %v2885_v24 }
 0x4b5   :  { %3703 = vmatmul.mubr.msk.bf16.vlgmr.msra.gmra.mrb[4].mxu1 %vm91_vm2, %v3699_v0 }
 0x4b6   :  { %2651 = vmatpush1.bf16.msra.mxu1 %v2563_v37  ;;  %2682 = vmatprep.mubr.bf16.mxu1 %v4122_v3  ;;  %v2915_v37 = vsel %vm95_vm1, %v2895_v61, 0 }
 0x4b7   :  { %3707 = vmatprep.subr.msk.bf16.mxu1 %vm95_vm1, %v2716_v13 }
 0x4bd   :  { %3705 = vmatmul.mubr.msk.bf16.vlgmr.msra.gmra.mrb[8].mxu1 %vm91_vm2, %v3699_v0  ;;  %v4084_v0 = vpop.permute.xlu0 %4083 }
 0x4be   :  { %2745 = vmatpush1.bf16.msra.mxu1 %v2727_v21  ;;  %2776 = vmatprep.mubr.bf16.mxu1 %v4122_v3  ;;  %v4086_v4 = vunpack.i.h.bf16 %v4084_v0  ;;  %v4085_v6 = vunpack.i.l.bf16 %v4084_v0 }
 0x4bf   :  { %3709 = vmatprep.subr.msk.bf16.mxu1 %vm95_vm1, %v2718_v19 }
 0x4c0   :  { %v3064_v9 = vsel %vm1366_vm8, %v4086_v4, %v3054_v8  ;;  %v3065_v17 = vsel %vm1366_vm8, %v4085_v6, %v4086_v4  ;;  %v3066_v27 = vsel %vm1366_vm8, %v3060_v23, %v4085_v6 }
 0x4c1   :  { %v4089_v7 = vpop.permute.xlu0 %4088  ;;  %v3068_v13 = vpack.c.bf16 %v3064_v9, %v3064_v9  ;;  %v3067_v33 = vpack.c.bf16 %v3065_v17, %v3065_v17 }
 0x4c2   :  { %v4091_v15 = vunpack.i.h.bf16 %v4089_v7  ;;  %v4090_v16 = vunpack.i.l.bf16 %v4089_v7 }
 0x4c3   :  { %v3079_v21 = vsel %vm95_vm1, %v3067_v33, 0 }
 0x4c4   :  { %v3062_v18 = vsel %vm1366_vm8, %v4090_v16, %v4091_v15  ;;  %v3063_v22 = vsel %vm1366_vm8, %v3054_v8, %v4090_v16  ;;  %v3061_v26 = vsel %vm1366_vm8, %v4091_v15, %v3060_v23 }
 0x4c5   :  { %3708 = vmatmul.mubr.msk.bf16.vlgmr.msra.gmra.mrb[0].mxu1 %vm91_vm2, %v3706_v28  ;;  %v3070_v19 = vpack.c.bf16 %v3062_v18, %v3062_v18  ;;  %v3069_v25 = vpack.c.bf16 %v3063_v22, %v3063_v22  ;;  %v4094_v30 = vpop.permute.xlu0 %4093  ;;  %v3071_v36 = vpack.c.bf16 %v3061_v26, %v3061_v26 }
 0x4c6   :  { %2786 = vmatpush1.bf16.msra.mxu1 %v2733_v43  ;;  %2817 = vmatprep.mubr.bf16.mxu1 %v4122_v3  ;;  %v4096_v35 = vunpack.i.h.bf16 %v4094_v30  ;;  %v4095_v38 = vunpack.i.l.bf16 %v4094_v30 }
 0x4c7   :  { %3711 = vmatprep.subr.msk.bf16.mxu1 %vm95_vm1, %v2720_v31  ;;  %v3072_v31 = vpack.c.bf16 %v3066_v27, %v3066_v27  ;;  %v3085_v43 = vsel %vm95_vm1, %v3069_v25, 0 }
 0x4c8   :  { %v3240_v39 = vsel %vm1561_vm9, %v4096_v35, %v3230_v34  ;;  %v3241_v52 = vsel %vm1561_vm9, %v4095_v38, %v4096_v35  ;;  %v3242_v60 = vsel %vm1561_vm9, %v3236_v57, %v4095_v38 }
 0x4c9   :  { %v4099_v40 = vpop.permute.xlu0 %4098  ;;  %v3243_v53 = vpack.c.bf16 %v3241_v52, %v3241_v52  ;;  %v3248_v0 = vpack.c.bf16 %v3242_v60, %v3242_v60 }
 0x4ca   :  { %v4101_v49 = vunpack.i.h.bf16 %v4099_v40  ;;  %v4100_v50 = vunpack.i.l.bf16 %v4099_v40 }
 0x4cc   :  { %v3238_v54 = vsel %vm1561_vm9, %v4100_v50, %v4101_v49  ;;  %v3239_v5 = vsel %vm1561_vm9, %v3230_v34, %v4100_v50 }
 0x4cd   :  { %3710 = vmatmul.mubr.msk.bf16.vlgmr.msra.gmra.mrb[4].mxu1 %vm91_vm2, %v3706_v28  ;;  %v3245_v1 = vpack.c.bf16 %v3239_v5, %v3239_v5 }
 0x4ce   :  { %2827 = vmatpush1.bf16.msra.mxu1 %v2739_v10  ;;  %2858 = vmatprep.mubr.bf16.mxu1 %v4122_v3  ;;  %v3091_v10 = vsel %vm95_vm1, %v3071_v36, 0 }
 0x4cf   :  { %3714 = vmatprep.subr.msk.bf16.mxu1 %vm95_vm1, %v2892_v44  ;;  %v3244_v44 = vpack.c.bf16 %v3240_v39, %v3240_v39 }
 0x4d5   :  { %3712 = vmatmul.mubr.msk.bf16.vlgmr.msra.gmra.mrb[8].mxu1 %vm91_vm2, %v3706_v28  ;;  %v3720_v28 = vld [vmem:[%s4996_s2 + $0x1c] sm:$0xf] }
 0x4d6   :  { %2921 = vmatpush1.bf16.msra.mxu1 %v2903_v46  ;;  %2952 = vmatprep.mubr.bf16.mxu1 %v4122_v3  ;;  %v3255_v46 = vsel %vm95_vm1, %v3243_v53, 0 }
 0x4d7   :  { %3716 = vmatprep.subr.msk.bf16.mxu1 %vm95_vm1, %v2894_v55  ;;  %v3246_v55 = vpack.c.bf16 %v3238_v54, %v3238_v54 }
 0x4dd   :  { %3715 = vmatmul.mubr.msk.bf16.vlgmr.msra.gmra.mrb[0].mxu1 %vm91_vm2, %v3713_v59 }
 0x4de   :  { %2962 = vmatpush1.bf16.msra.mxu1 %v2909_v62  ;;  %2993 = vmatprep.mubr.bf16.mxu1 %v4122_v3  ;;  %v3237_v62 = vsel %vm1561_vm9, %v4101_v49, %v3236_v57  ;;  %v3438_v49 = vpop.xlane.xlu1 %3437 }
 0x4df   :  { %3718 = vmatprep.subr.msk.bf16.mxu1 %vm95_vm1, %v2896_v45  ;;  %v3261_v45 = vsel %vm95_vm1, %v3245_v1, 0  ;;  %v3247_v24 = vpack.c.bf16 %v3237_v62, %v3237_v62  ;;  %v3466_v52 = vmul.f32 0.001953125, %v3438_v49 }
 0x4e1   :  { %v3267_v8 = vsel %vm95_vm1, %v3247_v24, 0 }
 0x4e5   :  { %3717 = vmatmul.mubr.msk.bf16.vlgmr.msra.gmra.mrb[4].mxu1 %vm91_vm2, %v3713_v59 }
 0x4e6   :  { %3003 = vmatpush1.bf16.msra.mxu1 %v2915_v37  ;;  %3034 = vmatprep.mubr.bf16.mxu1 %v4122_v3 }
 0x4e7   :  { %3721 = vmatprep.subr.msk.bf16.mxu1 %vm95_vm1, %v3068_v13 }
 0x4ed   :  { %3719 = vmatmul.mubr.msk.bf16.vlgmr.msra.gmra.mrb[8].mxu1 %vm91_vm2, %v3713_v59  ;;  %v3727_v59 = vld [vmem:[%s4996_s2 + $0x20] sm:$0xf] }
 0x4ee   :  { %3097 = vmatpush1.bf16.msra.mxu1 %v3079_v21  ;;  %3128 = vmatprep.mubr.bf16.mxu1 %v4122_v3 }
 0x4ef   :  { %3723 = vmatprep.subr.msk.bf16.mxu1 %vm95_vm1, %v3070_v19 }
 0x4f5   :  { %3722 = vmatmul.mubr.msk.bf16.vlgmr.msra.gmra.mrb[0].mxu1 %vm91_vm2, %v3720_v28 }
 0x4f6   :  { %3138 = vmatpush1.bf16.msra.mxu1 %v3085_v43  ;;  %3169 = vmatprep.mubr.bf16.mxu1 %v4122_v3 }
 0x4f7   :  { %3725 = vmatprep.subr.msk.bf16.mxu1 %vm95_vm1, %v3072_v31 }
 0x4fd   :  { %3724 = vmatmul.mubr.msk.bf16.vlgmr.msra.gmra.mrb[4].mxu1 %vm91_vm2, %v3720_v28 }
 0x4fe   :  { %3179 = vmatpush1.bf16.msra.mxu1 %v3091_v10  ;;  %3210 = vmatprep.mubr.bf16.mxu1 %v4122_v3 }
 0x4ff   :  { %3728 = vmatprep.subr.msk.bf16.mxu1 %vm95_vm1, %v3244_v44  ;;  %v4132_v44 = vmov 2  }
 0x500   :  { %4102 = vset.pattern.permute.xlu1 %v4132_v44 }
 0x505   :  { %3726 = vmatmul.mubr.msk.bf16.vlgmr.msra.gmra.mrb[8].mxu1 %vm91_vm2, %v3720_v28 }
 0x506   :  { %3273 = vmatpush1.bf16.msra.mxu1 %v3255_v46  ;;  %3304 = vmatprep.mubr.bf16.mxu1 %v4122_v3  ;;  %v3468_v46 = vmul.f32 %v3466_v52, %v3466_v52 }
 0x507   :  { %3730 = vmatprep.subr.msk.bf16.mxu1 %vm95_vm1, %v3246_v55 }
 0x50d   :  { %3729 = vmatmul.mubr.msk.bf16.vlgmr.msra.gmra.mrb[0].mxu1 %vm91_vm2, %v3727_v59 }
 0x50e   :  { %3314 = vmatpush1.bf16.msra.mxu1 %v3261_v45  ;;  %3345 = vmatprep.mubr.bf16.mxu1 %v4122_v3 }
 0x50f   :  { %3732 = vmatprep.subr.msk.bf16.mxu1 %vm95_vm1, %v3248_v0 }
 0x515   :  { %3731 = vmatmul.mubr.msk.bf16.vlgmr.msra.gmra.mrb[4].mxu1 %vm91_vm2, %v3727_v59 }
 0x516   :  { %3355 = vmatpush1.bf16.msra.mxu1 %v3267_v8  ;;  %3386 = vmatprep.mubr.bf16.mxu1 %v4122_v3 }
 0x51d   :  { %3733 = vmatmul.mubr.msk.bf16.vlgmr.msra.gmra.mrb[8].mxu1 %vm91_vm2, %v3727_v59  ;;  %v4133_v59 = vmov 3  }
 0x51e   :  { %4104 = vset.pattern.permute.xlu0 %v4133_v59 }
 0x5e0   :  { %v4895_v4 = vpop.f32.mrb[0].mxu1 }
 0x5e1   :  { %v3401_v61 = vmul.f32 %v4895_v4, %v4510_v41  ;;  %v4899_v6 = vpop.f32.mrb[1].mxu1 }
 0x5e2   :  { %v3402_v9 = vmul.f32 %v4899_v6, %v4512_v42  ;;  %v3310_v7 = vpop.f32.mrb[2].mxu1 }
 0x5e3   :  { %v3413_v13 = vmul.f32 %v3401_v61, %v3401_v61  ;;  %v3311_v37 = vpop.f32.mrb[3].mxu1 }
 0x5e4   :  { %v3414_v15 = vmul.f32 %v3402_v9, %v3402_v9  ;;  %v3425_v16 = vadd.f32 %v3402_v9, %v3401_v61  ;;  %v4134_v61 = vmov 4   ;;  %v4135_v9 = vmov 5  }
 0x5e6   :  { %v3439_v17 = vadd.f32 %v3414_v15, %v3413_v13 }
 0x5e8   :  { %v4903_v33 = vpop.f32.mrb[4].mxu1 }
 0x5e9   :  { %v3403_v3 = vmul.f32 %v4903_v33, %v4530_v56  ;;  %v4907_v18 = vpop.f32.mrb[5].mxu1 }
 0x5ea   :  { %v3404_v41 = vmul.f32 %v4907_v18, %v4532_v58  ;;  %v3351_v19 = vpop.f32.mrb[6].mxu1 }
 0x5eb   :  { %v3415_v21 = vmul.f32 %v3403_v3, %v3403_v3  ;;  %v3426_v22 = vadd.f32 %v3425_v16, %v3403_v3  ;;  %v3352_v42 = vpop.f32.mrb[7].mxu1 }
 0x5ec   :  { %v3416_v23 = vmul.f32 %v3404_v41, %v3404_v41 }
 0x5ed   :  { %v3440_v25 = vadd.f32 %v3439_v17, %v3415_v21  ;;  %v3427_v27 = vadd.f32 %v3426_v22, %v3404_v41 }
 0x5ef   :  { %v3441_v28 = vadd.f32 %v3440_v25, %v3416_v23 }
 0x5f0   :  { %v4911_v30 = vpop.f32.mrb[8].mxu1 }
 0x5f1   :  { %v3405_v31 = vmul.f32 %v4911_v30, %v4550_v14  ;;  %v4915_v43 = vpop.f32.mrb[9].mxu1 }
 0x5f2   :  { %v3406_v56 = vmul.f32 %v4915_v43, %v4552_v20  ;;  %v3392_v26 = vpop.f32.mrb[10].mxu1 }
 0x5f3   :  { %v3417_v58 = vmul.f32 %v3405_v31, %v3405_v31  ;;  %v3393_v34 = vpop.f32.mrb[11].mxu1  ;;  %v3428_v35 = vadd.f32 %v3427_v27, %v3405_v31 }
 0x5f4   :  { %v3418_v36 = vmul.f32 %v3406_v56, %v3406_v56 }
 0x5f5   :  { %v3429_v38 = vadd.f32 %v3428_v35, %v3406_v56  ;;  %v3442_v39 = vadd.f32 %v3441_v28, %v3417_v58 }
 0x5f7   :  { %3430 = vadd.xlane.f32.xlu0 %v3429_v38  ;;  %v3443_v40 = vadd.f32 %v3442_v39, %v3418_v36 }
 0x5fb   :  { %3444 = vadd.xlane.f32.xlu0 %v3443_v40 }
 0x5ff   :  { %3451 = vadd.xlane.f32.xlu0 %v4566_v48 }
 0x684   :  { %v3431_v14 = vpop.xlane.xlu0 %3430 }
 0x685   :  { %v3453_v10 = vmul.f32 0.001953125, %v3431_v14 }
 0x687   :  { %v3455_v20 = vmul.f32 %v3453_v10, %v3453_v10 }
 0x688   :  { %v3445_v50 = vpop.xlane.xlu0 %3444 }
 0x689   :  { %v3454_v53 = vmul.f32 0.001953125, %v3445_v50 }
 0x68b   :  { %v3456_v54 = vsub.f32 %v3454_v53, %v3455_v20 }
 0x68c   :  { %v3452_v55 = vpop.xlane.xlu0 %3451 }
 0x68d   :  { %v3457_v5 = vadd.f32 1e-05, %v3456_v54  ;;  %v3467_v57 = vmul.f32 0.001953125, %v3452_v55 }
 0x68f   :  { %4118 = vrsqrt.f32 %v3457_v5  ;;  %v3469_v1 = vsub.f32 %v3467_v57, %v3468_v46 }
 0x691   :  { %v3470_v60 = vadd.f32 1e-05, %v3469_v1 }
 0x693   :  { %4120 = vrsqrt.f32 %v3470_v60 }
 0x699   :  { %v4119_v48 = vpop.eup %4118 }
 0x69a   :  { %v3459_v0 = vmul.f32 %v4119_v48, %v4571_v2 }
 0x69c   :  { %v3460_v45 = vmul.f32 %v3459_v0, %v3453_v10 }
 0x69d   :  { %v4121_v62 = vpop.eup %4120 }
 0x69e   :  { %3462 = vrot.lane.b32.xlu1 %v3460_v45, %s4126_s0  ;;  %v3472_v24 = vmul.f32 %v4121_v62, %v4571_v2 }
 0x6a0   :  { %v3473_v8 = vmul.f32 %v3472_v24, %v3466_v52 }
 0x6a2   :  { %3481 = vperm.xlu1 %4102, %v3459_v0   ;;  %3475 = vrot.lane.b32.xlu0 %v3473_v8, %s4126_s0 }
 0x6a6   :  { %4103 = vset.pattern.permute.xlu1 %v4134_v61 }
 0x6a7   :  { %3503 = vperm.xlu1 %4103, %v3472_v24  }
 0x6ab   :  { %4105 = vset.pattern.permute.xlu1 %v4135_v9 }
 0x710   :  { %v3463_v7 = vpop.permute.xlu1 %3462 }
 0x711   :  { %v3465_v13 = vsub.f32 %v4571_v2, %v3463_v7 }
 0x713   :  { %3492 = vperm.xlu0 %4104, %v3465_v13  }
 0x714   :  { %v3476_v37 = vpop.permute.xlu0 %3475 }
 0x715   :  { %v3478_v15 = vsub.f32 %v4571_v2, %v3476_v37 }
 0x717   :  { %3514 = vperm.xlu1 %4105, %v3478_v15   ;;  %4106 = vset.pattern.permute.xlu0 %v4135_v9 }
 0x721   :  { %v3482_v16 = vpop.permute.xlu1 %3481 }
 0x722   :  { %v3485_v41 = vmul.f32 %v3482_v16, %v4899_v6  ;;  %v3484_v19 = vmul.f32 %v3482_v16, %v4895_v4  ;;  %v3487_v21 = vmul.f32 %v3482_v16, %v4907_v18  ;;  %v3486_v22 = vmul.f32 %v3482_v16, %v4903_v33 }
 0x723   :  { %v3489_v25 = vmul.f32 %v3482_v16, %v4915_v43  ;;  %v3488_v2 = vmul.f32 %v3482_v16, %v4911_v30 }
 0x726   :  { %v3504_v17 = vpop.permute.xlu1 %3503 }
 0x727   :  { %v3507_v42 = vmul.f32 %v3504_v17, %v4526_v51  ;;  %v3506_v23 = vmul.f32 %v3504_v17, %v4522_v47  ;;  %v3509_v27 = vmul.f32 %v3504_v17, %v4546_v12  ;;  %v3508_v28 = vmul.f32 %v3504_v17, %v4542_v63 }
 0x728   :  { %v3511_v6 = vmul.f32 %v3504_v17, %v4560_v32  ;;  %v3510_v4 = vmul.f32 %v3504_v17, %v4556_v29 }
 0x792   :  { %v3493_v3 = vpop.permute.xlu0 %3492 }
 0x793   :  { %v3496_v18 = vadd.f32 %v3493_v3, %v3485_v41  ;;  %v3495_v56 = vadd.f32 %v3493_v3, %v3484_v19  ;;  %v3498_v33 = vadd.f32 %v3493_v3, %v3487_v21  ;;  %v3497_v26 = vadd.f32 %v3493_v3, %v3486_v22 }
 0x794   :  { %v3500_v43 = vadd.f32 %v3493_v3, %v3489_v25  ;;  %v3499_v30 = vadd.f32 %v3493_v3, %v3488_v2 }
 0x796   :  { %v3515_v31 = vpop.permute.xlu1 %3514 }
 0x797   :  { %v3518_v51 = vadd.f32 %v3515_v31, %v3507_v42  ;;  %v3517_v58 = vadd.f32 %v3515_v31, %v3506_v23  ;;  %v3520_v47 = vadd.f32 %v3515_v31, %v3509_v27  ;;  %v3519_v34 = vadd.f32 %v3515_v31, %v3508_v28 }
 0x798   :  { %v3522_v35 = vadd.f32 %v3515_v31, %v3511_v6  ;;  %v3521_v36 = vadd.f32 %v3515_v31, %v3510_v4 }
 0x799   :  { %v3524_v12 = vadd.f32 %v3518_v51, %v3496_v18  ;;  %v3523_v38 = vadd.f32 %v3517_v58, %v3495_v56  ;;  %v3526_v63 = vadd.f32 %v3520_v47, %v3498_v33  ;;  %v3525_v39 = vadd.f32 %v3519_v34, %v3497_v26 }
 0x79a   :  { %v3528_v32 = vadd.f32 %v3522_v35, %v3500_v43  ;;  %v3527_v40 = vadd.f32 %v3521_v36, %v3499_v30 }
 0x79b   :  { %v3530_v29 = vmax.f32 %v3524_v12, 0.0  ;;  %v3529_v44 = vmax.f32 %v3523_v38, 0.0  ;;  %v3532_v14 = vmax.f32 %v3526_v63, 0.0  ;;  %v3531_v10 = vmax.f32 %v3525_v39, 0.0 }
 0x79c   :  { %v3534_v49 = vmax.f32 %v3528_v32, 0.0  ;;  %v3533_v50 = vmax.f32 %v3527_v40, 0.0 }
 0x79d   :  { %3537 = vrot.lane.b32.xlu0 %v3530_v29, %s4127_s8  ;;  %3535 = vrot.lane.b32.xlu1 %v3529_v44, %s4127_s8 }
 0x7a1   :  { %3541 = vrot.lane.b32.xlu0 %v3532_v14, %s4127_s8  ;;  %3539 = vrot.lane.b32.xlu1 %v3531_v10, %s4127_s8 }
 0x7a5   :  { %3545 = vrot.lane.b32.xlu0 %v3534_v49, %s4127_s8  ;;  %3543 = vrot.lane.b32.xlu1 %v3533_v50, %s4127_s8 }
 0x80f   :  { %v3538_v52 = vpop.permute.xlu0 %3537  ;;  %v3536_v20 = vpop.permute.xlu1 %3535 }
 0x810   :  { %v3551_v53 = vsel %vm976_vm6, %v3536_v20, %v3538_v52 }
 0x811   :  { %v3553_v54 = vmax.f32 %v3529_v44, %v3551_v53 }
 0x813   :  { %v3542_v55 = vpop.permute.xlu0 %3541  ;;  %3559 = vrot.lane.b32.xlu1 %v3553_v54, %s4129_s10  ;;  %v3540_v46 = vpop.permute.xlu1 %3539 }
 0x814   :  { %v3549_v5 = vsel %vm976_vm6, %v3540_v46, %v3542_v55  ;;  %v3550_v57 = vsel %vm976_vm6, %v3538_v52, %v3540_v46 }
 0x815   :  { %v3554_v1 = vmax.f32 %v3530_v29, %v3550_v57  ;;  %v3555_v60 = vmax.f32 %v3531_v10, %v3549_v5 }
 0x817   :  { %v3546_v59 = vpop.permute.xlu0 %3545  ;;  %3561 = vrot.lane.b32.xlu0 %v3554_v1, %s4129_s10  ;;  %3563 = vrot.lane.b32.xlu1 %v3555_v60, %s4129_s10  ;;  %v3544_v48 = vpop.permute.xlu1 %3543 }
 0x818   :  { %v3547_v0 = vsel %vm976_vm6, %v3544_v48, %v3546_v59  ;;  %v3548_v45 = vsel %vm976_vm6, %v3542_v55, %v3544_v48  ;;  %v3552_v8 = vsel %vm976_vm6, %v3546_v59, %v3536_v20 }
 0x819   :  { %v3556_v62 = vmax.f32 %v3532_v14, %v3548_v45  ;;  %v3557_v24 = vmax.f32 %v3533_v50, %v3547_v0  ;;  %v3558_v61 = vmax.f32 %v3534_v49, %v3552_v8 }
 0x81b   :  { %3565 = vrot.lane.b32.xlu0 %v3556_v62, %s4129_s10  ;;  %3567 = vrot.lane.b32.xlu1 %v3557_v24, %s4129_s10 }
 0x81f   :  { %3569 = vrot.lane.b32.xlu0 %v3558_v61, %s4129_s10 }
 0x885   :  { %v3560_v9 = vpop.permute.xlu1 %3559 }
 0x889   :  { %v3562_v7 = vpop.permute.xlu0 %3561  ;;  %v3564_v13 = vpop.permute.xlu1 %3563 }
 0x88a   :  { %v3575_v37 = vsel %vm1366_vm8, %v3560_v9, %v3562_v7  ;;  %v3574_v15 = vsel %vm1366_vm8, %v3562_v7, %v3564_v13 }
 0x88b   :  { %v3577_v16 = vmax.f32 %v3553_v54, %v3575_v37  ;;  %v3578_v17 = vmax.f32 %v3554_v1, %v3574_v15 }
 0x88d   :  { %3583 = vst [vmem:[%s4997_s5] sm:$0xff] %v3577_v16  ;;  %3584 = vst [vmem:[%s4997_s5 + $0x8] sm:$0xff] %v3578_v17  ;;  %v3566_v3 = vpop.permute.xlu0 %3565  ;;  %v3568_v41 = vpop.permute.xlu1 %3567 }
 0x88e   :  { %v3573_v19 = vsel %vm1366_vm8, %v3564_v13, %v3566_v3  ;;  %v3572_v21 = vsel %vm1366_vm8, %v3566_v3, %v3568_v41 }
 0x88f   :  { %v3579_v22 = vmax.f32 %v3555_v60, %v3573_v19  ;;  %v3580_v42 = vmax.f32 %v3556_v62, %v3572_v21 }
 0x891   :  { %3585 = vst [vmem:[%s4997_s5 + $0x10] sm:$0xff] %v3579_v22  ;;  %3586 = vst [vmem:[%s4997_s5 + $0x18] sm:$0xff] %v3580_v42  ;;  %v3570_v23 = vpop.permute.xlu0 %3569 }
 0x892   :  { %v3571_v25 = vsel %vm1366_vm8, %v3568_v41, %v3570_v23  ;;  %v3576_v2 = vsel %vm1366_vm8, %v3570_v23, %v3560_v9 }
 0x893   :  { %v3581_v27 = vmax.f32 %v3557_v24, %v3571_v25  ;;  %v3582_v28 = vmax.f32 %v3558_v61, %v3576_v2 }
 0x895   :  { %3587 = vst [vmem:[%s4997_s5 + $0x20] sm:$0xff] %v3581_v27  ;;  %3588 = vst [vmem:[%s4997_s5 + $0x28] sm:$0xff] %v3582_v28 }

</bundles_post_ra>
